<compile_context>
chip_gen: v7x
topology: tpu7x:2x2x1
jax: 0.10.0
libtpu: 0.0.40
codegen_flags: <defaults>
</compile_context>

<pallas_src>
import functools
import math

import jax
import jax.numpy as jnp
from jax.experimental import pallas as pl
from jax.experimental.pallas import tpu as pltpu


FLOW_WIDTH = 128      # padded lane/feature width of the flow-MLP hidden layers
FLOW_TILE = 1024      # query points per flow-MLP grid step (sweep 512..2048)


def _round_up(x, m):
    return -(-x // m) * m


# ============================================================================
# Scene encoder: one fused whole-array kernel (no grid).
# Emits the per-batch folded layer-1 bias of the flow MLP.
# ============================================================================
def _scene_kernel(patch_ref, traj_ref, t_ref, wp, bp, wm1, bm1, wm2, bm2,
                  wc, bc, w1ctx, w1t, b1, o_ref, *, n_batch, n_patch, n_agents):
    tok = wp.shape[1]

    def batched_mean(x, group):
        # x rows MUST be batch-major contiguous: [b0 g0..g_{group-1}, b1 ...].
        # (Guaranteed by the reshapes in occupancy_flow_forward.)
        rows = x.shape[0]
        r = jax.lax.broadcasted_iota(jnp.int32, (n_batch, rows), 1)
        g = jax.lax.broadcasted_iota(jnp.int32, (n_batch, rows), 0)
        sel = jnp.logical_and(r >= g * group, r < (g + 1) * group)
        avg = jnp.where(sel, 1.0 / group, 0.0).astype(jnp.float32)
        return jnp.dot(avg, x, preferred_element_type=jnp.float32)  # MXU reduce

    # Road-map patch embedding (conv-as-matmul) + ReLU + per-batch mean.
    tokens = jnp.dot(patch_ref[...], wp[...],
                     preferred_element_type=jnp.float32) + bp[...]
    tokens = jnp.maximum(tokens, 0.0)
    road_feat = batched_mean(tokens, n_patch)                 # (B, tok)

    # Motion encoder over agent trajectories (2-layer MLP) + per-batch mean.
    m = jnp.dot(traj_ref[...], wm1[...],
                preferred_element_type=jnp.float32) + bm1[...]
    m = jnp.maximum(m, 0.0)
    m = jnp.dot(m, wm2[...], preferred_element_type=jnp.float32) + bm2[...]
    motion_feat = batched_mean(m, n_agents)                   # (B, tok)

    # Fusion -> scene context; concat([road, motion]) @ wc done as split matmul.
    wc_all = wc[...]                                          # (2*tok, E)
    ctx = (jnp.dot(road_feat, wc_all[:tok, :],
                   preferred_element_type=jnp.float32)
           + jnp.dot(motion_feat, wc_all[tok:, :],
                     preferred_element_type=jnp.float32)
           + bc[...])                                         # (B, E)

    # Fold the flow-MLP layer-1 contribution of (t, scene_context) into a
    # per-batch effective bias -- exact, all in f32.
    bias_eff = (b1[...] + t_ref[...] * w1t[...]
                + jnp.dot(ctx, w1ctx[...], preferred_element_type=jnp.float32))
    o_ref[...] = bias_eff.astype(o_ref.dtype)                 # (B, 128)


def scene_encode_bias(patches, traj, t, params, *, n_batch, n_patch, n_agents):
    # Whole-array kernel (no tiling path): keep inputs well inside scoped VMEM.
    in_bytes = 4 * (patches.size + traj.size)
    assert in_bytes < 4 * 1024 * 1024, (
        "scene encoder inputs exceed the whole-array VMEM budget; add tiling")
    t_col = t.reshape(n_batch, 1).astype(jnp.float32)
    kernel = functools.partial(_scene_kernel, n_batch=n_batch,
                               n_patch=n_patch, n_agents=n_agents)
    return pl.pallas_call(
        kernel,
        out_shape=jax.ShapeDtypeStruct((n_batch, FLOW_WIDTH), jnp.float32),
    )(patches.astype(jnp.float32), traj.astype(jnp.float32), t_col,
      params["w_patch"], params["b_patch"],
      params["w_m1"], params["b_m1"],
      params["w_m2"], params["b_m2"],
      params["w_ctx"], params["b_ctx"],
      params["flow_w1ctx"], params["flow_w1t"], params["flow_b1"])


# ============================================================================
# Flow-field MLP kernel, transposed layout: activations are (feature, point).
# ============================================================================
def _flow_kernel(h_ref, bias_ref, hproj_ref, w1f_ref, wstack_ref, bias2_ref,
                 o_ref, *, num_freqs, four_pad):
    hv = h_ref[...]                              # (8, tn) f32; rows 0,1 = x,y

    # ---- layer 1, split form (kept in f32: preserves query-point precision) --
    # one matmul gives BOTH the Fourier pre-activations and the linear-in-h term
    pre = jnp.dot(hproj_ref[...], hv,
                  preferred_element_type=jnp.float32)        # (four_pad+128, tn)
    proj = pre[:four_pad, :]                                 # (four_pad, tn)
    lin_h = pre[four_pad:, :]                                # (128, tn)

    # phase trick: rows < 2F get sin, rows >= 2F get cos — ONE EUP pass.
    row = jax.lax.broadcasted_iota(jnp.int32, proj.shape, 0)
    phase = jnp.where(row < 2 * num_freqs, 0.0, 0.5 * math.pi)
    feats = jnp.sin(proj + phase)                            # (four_pad, tn)

    x1 = (lin_h
          + jnp.dot(w1f_ref[...], feats, preferred_element_type=jnp.float32)
          + bias_ref[...])                                   # + bias_eff[b]
    act = jnp.tanh(x1).astype(jnp.bfloat16)                  # (128, tn)

    # ---- layers 2..5: bf16 MXU operands, f32 accumulate, tanh in f32 --------
    y = None
    for li in range(4):
        y = (jnp.dot(wstack_ref[li], act, preferred_element_type=jnp.float32)
             + bias2_ref[li])                                # (128, tn)
        if li < 3:
            act = jnp.tanh(y).astype(jnp.bfloat16)

    # flow components live in rows 0..1; narrow lane-dense store.
    o_ref[...] = y[:2, :].astype(o_ref.dtype)                # (2, tn)


def flow_field(h, bias_eff, params, *, num_freqs, tile=FLOW_TILE):
    B, N, two = h.shape
    assert two == 2
    four_pad = params["flow_w1f"].shape[1]

    # Tile size: as large as possible (amortize ~0.35us/step) but no larger
    # than needed; keep it a multiple of 128 so output stores stay lane-dense.
    tn = min(tile, _round_up(max(N, 128), 128))
    n_pad = _round_up(N, tn)
    # v7x has 2 TensorCores: keep >= 2 parallel programs when possible.
    while B * (n_pad // tn) < 2 and tn >= 256:
        tn //= 2
        n_pad = _round_up(N, tn)

    # Transposed, sublane-padded query layout (B, 8, n_pad); rows 0,1 = x,y.
    # This one small wrapper transpose makes every in-kernel vreg lane-dense
    # and removes all in-kernel transposes / concats.
    h_t = jnp.transpose(h.astype(jnp.float32), (0, 2, 1))     # (B, 2, N)
    h_t = jnp.pad(h_t, ((0, 0), (0, 6), (0, n_pad - N)))      # (B, 8, n_pad)
    bias3 = bias_eff.reshape(B, FLOW_WIDTH, 1).astype(jnp.float32)

    grid = (B, n_pad // tn)
    kernel = functools.partial(_flow_kernel, num_freqs=num_freqs,
                               four_pad=four_pad)
    out = pl.pallas_call(
        kernel,
        out_shape=jax.ShapeDtypeStruct((B, 2, n_pad), jnp.float32),
        grid=grid,
        in_specs=[
            pl.BlockSpec((None, 8, tn), lambda b, i: (b, 0, i)),          # h
            pl.BlockSpec((None, FLOW_WIDTH, 1), lambda b, i: (b, 0, 0)),  # bias_eff
            pl.BlockSpec(params["flow_hproj"].shape, lambda b, i: (0, 0)),
            pl.BlockSpec(params["flow_w1f"].shape, lambda b, i: (0, 0)),
            pl.BlockSpec(params["flow_wstack"].shape, lambda b, i: (0, 0, 0)),
            pl.BlockSpec(params["flow_bias2"].shape, lambda b, i: (0, 0, 0)),
        ],
        out_specs=pl.BlockSpec((None, 2, tn), lambda b, i: (b, 0, i)),
        compiler_params=pltpu.CompilerParams(
            dimension_semantics=("parallel", "parallel")),
    )(h_t, bias3, params["flow_hproj"], params["flow_w1f"],
      params["flow_wstack"], params["flow_bias2"])

    # (B, 2, N) -> (B, N, 2): tiny, 8 B/point.
    return jnp.transpose(out[:, :, :N], (0, 2, 1))


# ============================================================================
# Parameter construction (deterministic, PyTorch-Linear-style uniform init).
# ============================================================================
def _init_linear(key, fan_in, fan_out):
    kw, kb = jax.random.split(key)
    bound = 1.0 / math.sqrt(fan_in)
    w = jax.random.uniform(kw, (fan_in, fan_out), jnp.float32, -bound, bound)
    b = jax.random.uniform(kb, (1, fan_out), jnp.float32, -bound, bound)
    return w, b


def init_params(cfg, key):
    keys = jax.random.split(key, 9)
    C, P = cfg["road_channels"], cfg["patch"]
    patch_dim = C * P * P
    tok = cfg["token_dim"]
    hid_m = cfg["motion_encoder_hidden_dim"]
    T, F = cfg["motion_encoder_seq_len"], cfg["trajectory_feature_dim"]
    E = cfg["embedding_dim"]
    Hf = cfg["flow_field_hidden_dim"]
    nf = cfg["fourier"]
    four = 4 * nf
    four_pad = _round_up(four, 8)
    din = 2 + four + 1 + E                       # [h(2), fourier(4F), t(1), ctx(E)]
    assert Hf <= FLOW_WIDTH and E <= FLOW_WIDTH

    p = {}
    p["w_patch"], p["b_patch"] = _init_linear(keys[0], patch_dim, tok)
    p["w_m1"], p["b_m1"] = _init_linear(keys[1], T * F, hid_m)
    p["w_m2"], p["b_m2"] = _init_linear(keys[2], hid_m, tok)
    p["w_ctx"], p["b_ctx"] = _init_linear(keys[3], 2 * tok, E)

    # --- flow-MLP layer 1: one Linear(din, Hf), split by feature group -------
    w1, b1 = _init_linear(keys[4], din, Hf)
    w1_h = w1[0:2, :]                   # (2, Hf)
    w1_f = w1[2:2 + four, :]            # (four, Hf)
    w1_t = w1[2 + four:3 + four, :]     # (1, Hf)
    w1_ctx = w1[3 + four:, :]           # (E, Hf)

    # frequency matrix rows: [sin block ; cos block]; each block maps
    # (h_x, h_y) -> 2^k * pi * h_{x|y}.
    fvals = (2.0 ** jnp.arange(nf, dtype=jnp.float32)) * math.pi
    f_half = jnp.zeros((2 * nf, 2), jnp.float32)
    f_half = f_half.at[0::2, 0].set(fvals).at[1::2, 1].set(fvals)
    f_full = jnp.concatenate([f_half, f_half], axis=0)        # (4*nf, 2)

    # combined [F ; W1_h^T] projection of the (sublane-padded) query points.
    hp = jnp.zeros((four_pad + FLOW_WIDTH, 8), jnp.float32)
    hp = hp.at[:four, 0:2].set(f_full)
    hp = hp.at[four_pad:four_pad + Hf, 0:2].set(w1_h.T)
    p["flow_hproj"] = hp                                        # f32 (layer-1 fidelity)

    p["flow_w1f"] = jnp.zeros((FLOW_WIDTH, four_pad),
                              jnp.float32).at[:Hf, :four].set(w1_f.T)
    p["flow_w1ctx"] = jnp.zeros((E, FLOW_WIDTH),
                                jnp.float32).at[:, :Hf].set(w1_ctx)
    p["flow_w1t"] = jnp.zeros((1, FLOW_WIDTH), jnp.float32).at[:, :Hf].set(w1_t)
    p["flow_b1"] = jnp.zeros((1, FLOW_WIDTH), jnp.float32).at[:, :Hf].set(b1)

    # --- layers 2..5: pre-transposed, zero-padded to 128, stacked ------------
    # Zero padding is exact: padded weight rows/cols and bias entries are zero
    # and tanh(0)=0, so padding never leaks into the real 2 output rows.
    dims = [Hf, Hf, Hf, Hf, 2]
    wts, bcols = [], []
    for li in range(4):
        w, b = _init_linear(keys[5 + li], dims[li], dims[li + 1])
        wt = jnp.zeros((FLOW_WIDTH, FLOW_WIDTH),
                       jnp.float32).at[:dims[li + 1], :dims[li]].set(w.T)
        bc = jnp.zeros((FLOW_WIDTH, 1),
                       jnp.float32).at[:dims[li + 1], 0].set(b[0])
        wts.append(wt)
        bcols.append(bc)
    p["flow_wstack"] = jnp.stack(wts).astype(jnp.bfloat16)     # (4, 128, 128)
    p["flow_bias2"] = jnp.stack(bcols)                          # (4, 128, 1) f32
    return p


# ============================================================================
# Forward pass.
# ============================================================================
def occupancy_flow_forward(params, t, h, road_map, agent_trajectories, cfg):
    B, C, Hm, Wm = road_map.shape
    P = cfg["patch"]
    assert Hm % P == 0 and Wm % P == 0

    # Patchify the road map (pure layout work, done in XLA). Rows stay
    # batch-major -> contiguous per batch, as batched_mean requires.
    x = road_map.reshape(B, C, Hm // P, P, Wm // P, P)
    x = jnp.transpose(x, (0, 2, 4, 1, 3, 5))
    n_patch = (Hm // P) * (Wm // P)
    patches = x.reshape(B * n_patch, C * P * P)

    _, A, T, F = agent_trajectories.shape
    traj = agent_trajectories.reshape(B * A, T * F)

    # Scene encoder emits the per-batch folded layer-1 bias of the flow MLP
    # (exactly equivalent to computing scene_context then feeding it to the
    # flow field, but with t/ctx kept in f32 and one fewer HBM round trip).
    bias_eff = scene_encode_bias(patches, traj, t, params,
                                 n_batch=B, n_patch=n_patch, n_agents=A)
    return flow_field(h, bias_eff, params, num_freqs=cfg["fourier"])


# ----------------------------------------------------------------------------
if __name__ == "__main__":
    cfg = dict(
        road_map_image_size=16,
        road_channels=3,
        patch=4,
        trajectory_feature_dim=4,
        motion_encoder_hidden_dim=32,
        motion_encoder_seq_len=8,
        flow_field_hidden_dim=32,
        fourier=4,                 # flow_field_fourier_features
        token_dim=16,
        embedding_dim=32,
    )

    key = jax.random.PRNGKey(0)
    k_p, k_rm, k_tr, k_h, k_t = jax.random.split(key, 5)

    params = init_params(cfg, k_p)

    B, A, N = 2, 4, 256
    road_map = jax.random.normal(
        k_rm, (B, cfg["road_channels"], cfg["road_map_image_size"],
               cfg["road_map_image_size"]), jnp.float32)
    agent_trajectories = jax.random.normal(
        k_tr, (B, A, cfg["motion_encoder_seq_len"],
               cfg["trajectory_feature_dim"]), jnp.float32)
    h = jax.random.uniform(k_h, (B, N, 2), jnp.float32, -1.0, 1.0)
    t = jax.random.uniform(k_t, (B,), jnp.float32, 0.0, 1.0)

    fwd = jax.jit(functools.partial(occupancy_flow_forward, cfg=cfg))
    flow = jax.block_until_ready(fwd(params, t, h, road_map, agent_trajectories))

    assert flow.shape == (B, N, 2), flow.shape
    assert bool(jnp.all(jnp.isfinite(flow)))
    print("KERNEL_OK")
</pallas_src>

<mosaic_0001>
module attributes {stable_mosaic.version = 11 : i64} {
  func.func @_flow_kernel(%arg0: i32, %arg1: i32, %arg2: memref<1x8x256xf32, #tpu.memory_space<vmem>>, %arg3: memref<1x128x1xf32, #tpu.memory_space<vmem>>, %arg4: memref<144x8xf32, #tpu.memory_space<vmem>>, %arg5: memref<128x16xf32, #tpu.memory_space<vmem>>, %arg6: memref<4x128x128xbf16, #tpu.memory_space<vmem>>, %arg7: memref<4x128x1xf32, #tpu.memory_space<vmem>>, %arg8: memref<1x2x256xf32, #tpu.memory_space<vmem>>) attributes {dimension_semantics = [#tpu.dimension_semantics<parallel>, #tpu.dimension_semantics<parallel>], iteration_bounds = array<i64: 2, 1>, scalar_prefetch = 0 : i64, scratch_operands = 0 : i64, tpu.core_type = #tpu.core_type<tc>, window_params = [{transform_indices = @transform_0, window_bounds = array<i64: 1, 8, 256>}, {transform_indices = @transform_1, window_bounds = array<i64: 1, 128, 1>}, {pipeline_mode = #tpu.pipeline_mode<synchronous>, transform_indices = @transform_2, window_bounds = array<i64: 144, 8>}, {pipeline_mode = #tpu.pipeline_mode<synchronous>, transform_indices = @transform_3, window_bounds = array<i64: 128, 16>}, {pipeline_mode = #tpu.pipeline_mode<synchronous>, transform_indices = @transform_4, window_bounds = array<i64: 4, 128, 128>}, {pipeline_mode = #tpu.pipeline_mode<synchronous>, transform_indices = @transform_5, window_bounds = array<i64: 4, 128, 1>}, {transform_indices = @transform_6, window_bounds = array<i64: 1, 2, 256>}]} {
    %c0 = arith.constant 0 : index
    %c0_0 = arith.constant 0 : index
    %c0_1 = arith.constant 0 : index
    %0 = vector.load %arg2[%c0, %c0_0, %c0_1] : memref<1x8x256xf32, #tpu.memory_space<vmem>>, vector<1x8x256xf32>
    %1 = vector.shape_cast %0 : vector<1x8x256xf32> to vector<8x256xf32>
    %c0_2 = arith.constant 0 : index
    %c0_3 = arith.constant 0 : index
    %2 = vector.load %arg4[%c0_2, %c0_3] : memref<144x8xf32, #tpu.memory_space<vmem>>, vector<144x8xf32>
    %cst = arith.constant dense<0.000000e+00> : vector<144x256xf32>
    %3 = tpu.matmul %2, %1, %cst {dimension_numbers = #tpu.dot_dimension_numbers<[1], [0], [0], [1], [0, 0, 1, 1], [], []>} : vector<144x8xf32>, vector<8x256xf32>, vector<144x256xf32> -> vector<144x256xf32>
    %4 = vector.extract_strided_slice %3 {offsets = [0, 0], sizes = [16, 256], strides = [1, 1]} : vector<144x256xf32> to vector<16x256xf32>
    %5 = vector.extract_strided_slice %3 {offsets = [16, 0], sizes = [128, 256], strides = [1, 1]} : vector<144x256xf32> to vector<128x256xf32>
    %6 = tpu.iota {dimensions = array<i32: 0>} : vector<16x256xi32>
    %c8_i32 = arith.constant 8 : i32
    %7 = vector.broadcast %c8_i32 : i32 to vector<16x256xi32>
    %8 = arith.cmpi slt, %6, %7 : vector<16x256xi32>
    %cst_4 = arith.constant 0.000000e+00 : f32
    %cst_5 = arith.constant 1.57079637 : f32
    %9 = vector.broadcast %cst_4 : f32 to vector<16x256xf32>
    %10 = vector.broadcast %cst_5 : f32 to vector<16x256xf32>
    %11 = arith.select %8, %9, %10 : vector<16x256xi1>, vector<16x256xf32>
    %12 = arith.addf %4, %11 : vector<16x256xf32>
    %13 = math.sin %12 : vector<16x256xf32>
    %c0_6 = arith.constant 0 : index
    %c0_7 = arith.constant 0 : index
    %14 = vector.load %arg5[%c0_6, %c0_7] : memref<128x16xf32, #tpu.memory_space<vmem>>, vector<128x16xf32>
    %cst_8 = arith.constant dense<0.000000e+00> : vector<128x256xf32>
    %15 = tpu.matmul %14, %13, %cst_8 {dimension_numbers = #tpu.dot_dimension_numbers<[1], [0], [0], [1], [0, 0, 1, 1], [], []>} : vector<128x16xf32>, vector<16x256xf32>, vector<128x256xf32> -> vector<128x256xf32>
    %16 = arith.addf %5, %15 : vector<128x256xf32>
    %c0_9 = arith.constant 0 : index
    %c0_10 = arith.constant 0 : index
    %c0_11 = arith.constant 0 : index
    %17 = vector.load %arg3[%c0_9, %c0_10, %c0_11] : memref<1x128x1xf32, #tpu.memory_space<vmem>>, vector<1x128x1xf32>
    %18 = vector.shape_cast %17 : vector<1x128x1xf32> to vector<128x1xf32>
    %19 = vector.broadcast %18 : vector<128x1xf32> to vector<128x256xf32>
    %20 = arith.addf %16, %19 : vector<128x256xf32>
    %21 = math.tanh %20 : vector<128x256xf32>
    %22 = arith.truncf %21 : vector<128x256xf32> to vector<128x256xbf16>
    %c0_12 = arith.constant 0 : index
    %c0_13 = arith.constant 0 : index
    %c0_14 = arith.constant 0 : index
    %23 = vector.load %arg6[%c0_12, %c0_13, %c0_14] : memref<4x128x128xbf16, #tpu.memory_space<vmem>>, vector<1x128x128xbf16>
    %24 = vector.shape_cast %23 : vector<1x128x128xbf16> to vector<128x128xbf16>
    %cst_15 = arith.constant dense<0.000000e+00> : vector<128x256xf32>
    %25 = tpu.matmul %24, %22, %cst_15 {dimension_numbers = #tpu.dot_dimension_numbers<[1], [0], [0], [1], [0, 0, 1, 1], [], []>} : vector<128x128xbf16>, vector<128x256xbf16>, vector<128x256xf32> -> vector<128x256xf32>
    %c0_16 = arith.constant 0 : index
    %c0_17 = arith.constant 0 : index
    %c0_18 = arith.constant 0 : index
    %26 = vector.load %arg7[%c0_16, %c0_17, %c0_18] : memref<4x128x1xf32, #tpu.memory_space<vmem>>, vector<1x128x1xf32>
    %27 = vector.shape_cast %26 : vector<1x128x1xf32> to vector<128x1xf32>
    %28 = vector.broadcast %27 : vector<128x1xf32> to vector<128x256xf32>
    %29 = arith.addf %25, %28 : vector<128x256xf32>
    %30 = math.tanh %29 : vector<128x256xf32>
    %31 = arith.truncf %30 : vector<128x256xf32> to vector<128x256xbf16>
    %c1 = arith.constant 1 : index
    %c0_19 = arith.constant 0 : index
    %c0_20 = arith.constant 0 : index
    %32 = vector.load %arg6[%c1, %c0_19, %c0_20] : memref<4x128x128xbf16, #tpu.memory_space<vmem>>, vector<1x128x128xbf16>
    %33 = vector.shape_cast %32 : vector<1x128x128xbf16> to vector<128x128xbf16>
    %cst_21 = arith.constant dense<0.000000e+00> : vector<128x256xf32>
    %34 = tpu.matmul %33, %31, %cst_21 {dimension_numbers = #tpu.dot_dimension_numbers<[1], [0], [0], [1], [0, 0, 1, 1], [], []>} : vector<128x128xbf16>, vector<128x256xbf16>, vector<128x256xf32> -> vector<128x256xf32>
    %c1_22 = arith.constant 1 : index
    %c0_23 = arith.constant 0 : index
    %c0_24 = arith.constant 0 : index
    %35 = vector.load %arg7[%c1_22, %c0_23, %c0_24] : memref<4x128x1xf32, #tpu.memory_space<vmem>>, vector<1x128x1xf32>
    %36 = vector.shape_cast %35 : vector<1x128x1xf32> to vector<128x1xf32>
    %37 = vector.broadcast %36 : vector<128x1xf32> to vector<128x256xf32>
    %38 = arith.addf %34, %37 : vector<128x256xf32>
    %39 = math.tanh %38 : vector<128x256xf32>
    %40 = arith.truncf %39 : vector<128x256xf32> to vector<128x256xbf16>
    %c2 = arith.constant 2 : index
    %c0_25 = arith.constant 0 : index
    %c0_26 = arith.constant 0 : index
    %41 = vector.load %arg6[%c2, %c0_25, %c0_26] : memref<4x128x128xbf16, #tpu.memory_space<vmem>>, vector<1x128x128xbf16>
    %42 = vector.shape_cast %41 : vector<1x128x128xbf16> to vector<128x128xbf16>
    %cst_27 = arith.constant dense<0.000000e+00> : vector<128x256xf32>
    %43 = tpu.matmul %42, %40, %cst_27 {dimension_numbers = #tpu.dot_dimension_numbers<[1], [0], [0], [1], [0, 0, 1, 1], [], []>} : vector<128x128xbf16>, vector<128x256xbf16>, vector<128x256xf32> -> vector<128x256xf32>
    %c2_28 = arith.constant 2 : index
    %c0_29 = arith.constant 0 : index
    %c0_30 = arith.constant 0 : index
    %44 = vector.load %arg7[%c2_28, %c0_29, %c0_30] : memref<4x128x1xf32, #tpu.memory_space<vmem>>, vector<1x128x1xf32>
    %45 = vector.shape_cast %44 : vector<1x128x1xf32> to vector<128x1xf32>
    %46 = vector.broadcast %45 : vector<128x1xf32> to vector<128x256xf32>
    %47 = arith.addf %43, %46 : vector<128x256xf32>
    %48 = math.tanh %47 : vector<128x256xf32>
    %49 = arith.truncf %48 : vector<128x256xf32> to vector<128x256xbf16>
    %c3 = arith.constant 3 : index
    %c0_31 = arith.constant 0 : index
    %c0_32 = arith.constant 0 : index
    %50 = vector.load %arg6[%c3, %c0_31, %c0_32] : memref<4x128x128xbf16, #tpu.memory_space<vmem>>, vector<1x128x128xbf16>
    %51 = vector.shape_cast %50 : vector<1x128x128xbf16> to vector<128x128xbf16>
    %cst_33 = arith.constant dense<0.000000e+00> : vector<128x256xf32>
    %52 = tpu.matmul %51, %49, %cst_33 {dimension_numbers = #tpu.dot_dimension_numbers<[1], [0], [0], [1], [0, 0, 1, 1], [], []>} : vector<128x128xbf16>, vector<128x256xbf16>, vector<128x256xf32> -> vector<128x256xf32>
    %c3_34 = arith.constant 3 : index
    %c0_35 = arith.constant 0 : index
    %c0_36 = arith.constant 0 : index
    %53 = vector.load %arg7[%c3_34, %c0_35, %c0_36] : memref<4x128x1xf32, #tpu.memory_space<vmem>>, vector<1x128x1xf32>
    %54 = vector.shape_cast %53 : vector<1x128x1xf32> to vector<128x1xf32>
    %55 = vector.broadcast %54 : vector<128x1xf32> to vector<128x256xf32>
    %56 = arith.addf %52, %55 : vector<128x256xf32>
    %57 = vector.extract_strided_slice %56 {offsets = [0, 0], sizes = [2, 256], strides = [1, 1]} : vector<128x256xf32> to vector<2x256xf32>
    %c0_37 = arith.constant 0 : index
    %c0_38 = arith.constant 0 : index
    %c0_39 = arith.constant 0 : index
    %58 = vector.load %arg8[%c0_37, %c0_38, %c0_39] : memref<1x2x256xf32, #tpu.memory_space<vmem>>, vector<1x2x256xf32>
    %59 = vector.shape_cast %58 : vector<1x2x256xf32> to vector<2x256xf32>
    %60 = vector.shape_cast %57 : vector<2x256xf32> to vector<1x2x256xf32>
    tpu.vector_store %arg8[%c0_37, %c0_38, %c0_39], %60 {strides = array<i32>} : memref<1x2x256xf32, #tpu.memory_space<vmem>>, vector<1x2x256xf32>,
    return
  }
  func.func @transform_0(%arg0: i32, %arg1: i32) -> (i32, i32, i32) {
    %c0_i32 = arith.constant 0 : i32
    %c0_i32_0 = arith.constant 0 : i32
    return %arg0, %c0_i32, %arg1 : i32, i32, i32
  }
  func.func @transform_1(%arg0: i32, %arg1: i32) -> (i32, i32, i32) {
    %c0_i32 = arith.constant 0 : i32
    %c0_i32_0 = arith.constant 0 : i32
    %c0_i32_1 = arith.constant 0 : i32
    return %arg0, %c0_i32, %c0_i32_0 : i32, i32, i32
  }
  func.func @transform_2(%arg0: i32, %arg1: i32) -> (i32, i32) {
    %c0_i32 = arith.constant 0 : i32
    %c0_i32_0 = arith.constant 0 : i32
    %c0_i32_1 = arith.constant 0 : i32
    return %c0_i32, %c0_i32_0 : i32, i32
  }
  func.func @transform_3(%arg0: i32, %arg1: i32) -> (i32, i32) {
    %c0_i32 = arith.constant 0 : i32
    %c0_i32_0 = arith.constant 0 : i32
    %c0_i32_1 = arith.constant 0 : i32
    return %c0_i32, %c0_i32_0 : i32, i32
  }
  func.func @transform_4(%arg0: i32, %arg1: i32) -> (i32, i32, i32) {
    %c0_i32 = arith.constant 0 : i32
    %c0_i32_0 = arith.constant 0 : i32
    %c0_i32_1 = arith.constant 0 : i32
    %c0_i32_2 = arith.constant 0 : i32
    return %c0_i32, %c0_i32_0, %c0_i32_1 : i32, i32, i32
  }
  func.func @transform_5(%arg0: i32, %arg1: i32) -> (i32, i32, i32) {
    %c0_i32 = arith.constant 0 : i32
    %c0_i32_0 = arith.constant 0 : i32
    %c0_i32_1 = arith.constant 0 : i32
    %c0_i32_2 = arith.constant 0 : i32
    return %c0_i32, %c0_i32_0, %c0_i32_1 : i32, i32, i32
  }
  func.func @transform_6(%arg0: i32, %arg1: i32) -> (i32, i32, i32) {
    %c0_i32 = arith.constant 0 : i32
    %c0_i32_0 = arith.constant 0 : i32
    return %arg0, %c0_i32, %arg1 : i32, i32, i32
  }
}

module attributes {stable_mosaic.version = 11 : i64} {
  func.func @_scene_kernel(%arg0: memref<32x48xf32, #tpu.memory_space<vmem>>, %arg1: memref<8x32xf32, #tpu.memory_space<vmem>>, %arg2: memref<2x1xf32, #tpu.memory_space<vmem>>, %arg3: memref<48x16xf32, #tpu.memory_space<vmem>>, %arg4: memref<1x16xf32, #tpu.memory_space<vmem>>, %arg5: memref<32x32xf32, #tpu.memory_space<vmem>>, %arg6: memref<1x32xf32, #tpu.memory_space<vmem>>, %arg7: memref<32x16xf32, #tpu.memory_space<vmem>>, %arg8: memref<1x16xf32, #tpu.memory_space<vmem>>, %arg9: memref<32x32xf32, #tpu.memory_space<vmem>>, %arg10: memref<1x32xf32, #tpu.memory_space<vmem>>, %arg11: memref<32x128xf32, #tpu.memory_space<vmem>>, %arg12: memref<1x128xf32, #tpu.memory_space<vmem>>, %arg13: memref<1x128xf32, #tpu.memory_space<vmem>>, %arg14: memref<2x128xf32, #tpu.memory_space<vmem>>) attributes {dimension_semantics = [], scalar_prefetch = 0 : i64, scratch_operands = 0 : i64, tpu.core_type = #tpu.core_type<tc>} {
    %c0 = arith.constant 0 : index
    %c0_0 = arith.constant 0 : index
    %0 = vector.load %arg0[%c0, %c0_0] : memref<32x48xf32, #tpu.memory_space<vmem>>, vector<32x48xf32>
    %c0_1 = arith.constant 0 : index
    %c0_2 = arith.constant 0 : index
    %1 = vector.load %arg3[%c0_1, %c0_2] : memref<48x16xf32, #tpu.memory_space<vmem>>, vector<48x16xf32>
    %cst = arith.constant dense<0.000000e+00> : vector<32x16xf32>
    %2 = tpu.matmul %0, %1, %cst {dimension_numbers = #tpu.dot_dimension_numbers<[1], [0], [0], [1], [0, 0, 1, 1], [], []>} : vector<32x48xf32>, vector<48x16xf32>, vector<32x16xf32> -> vector<32x16xf32>
    %c0_3 = arith.constant 0 : index
    %c0_4 = arith.constant 0 : index
    %3 = vector.load %arg4[%c0_3, %c0_4] : memref<1x16xf32, #tpu.memory_space<vmem>>, vector<1x16xf32>
    %4 = vector.broadcast %3 : vector<1x16xf32> to vector<32x16xf32>
    %5 = arith.addf %2, %4 : vector<32x16xf32>
    %cst_5 = arith.constant 0.000000e+00 : f32
    %6 = vector.broadcast %cst_5 : f32 to vector<32x16xf32>
    %7 = arith.maximumf %5, %6 : vector<32x16xf32>
    %8 = tpu.iota {dimensions = array<i32: 1>} : vector<2x32xi32>
    %9 = tpu.iota {dimensions = array<i32: 0>} : vector<2x32xi32>
    %c16_i32 = arith.constant 16 : i32
    %10 = vector.broadcast %c16_i32 : i32 to vector<2x32xi32>
    %11 = arith.muli %9, %10 : vector<2x32xi32>
    %12 = arith.cmpi sge, %8, %11 : vector<2x32xi32>
    %c1_i32 = arith.constant 1 : i32
    %13 = vector.broadcast %c1_i32 : i32 to vector<2x32xi32>
    %14 = arith.addi %9, %13 : vector<2x32xi32>
    %c16_i32_6 = arith.constant 16 : i32
    %15 = vector.broadcast %c16_i32_6 : i32 to vector<2x32xi32>
    %16 = arith.muli %14, %15 : vector<2x32xi32>
    %17 = arith.cmpi slt, %8, %16 : vector<2x32xi32>
    %18 = arith.andi %12, %17 : vector<2x32xi1>
    %cst_7 = arith.constant 6.250000e-02 : f32
    %cst_8 = arith.constant 0.000000e+00 : f32
    %19 = vector.broadcast %cst_7 : f32 to vector<2x32xf32>
    %20 = vector.broadcast %cst_8 : f32 to vector<2x32xf32>
    %21 = arith.select %18, %19, %20 : vector<2x32xi1>, vector<2x32xf32>
    %cst_9 = arith.constant dense<0.000000e+00> : vector<2x16xf32>
    %22 = tpu.matmul %21, %7, %cst_9 {dimension_numbers = #tpu.dot_dimension_numbers<[1], [0], [0], [1], [0, 0, 1, 1], [], []>} : vector<2x32xf32>, vector<32x16xf32>, vector<2x16xf32> -> vector<2x16xf32>
    %c0_10 = arith.constant 0 : index
    %c0_11 = arith.constant 0 : index
    %23 = vector.load %arg1[%c0_10, %c0_11] : memref<8x32xf32, #tpu.memory_space<vmem>>, vector<8x32xf32>
    %c0_12 = arith.constant 0 : index
    %c0_13 = arith.constant 0 : index
    %24 = vector.load %arg5[%c0_12, %c0_13] : memref<32x32xf32, #tpu.memory_space<vmem>>, vector<32x32xf32>
    %cst_14 = arith.constant dense<0.000000e+00> : vector<8x32xf32>
    %25 = tpu.matmul %23, %24, %cst_14 {dimension_numbers = #tpu.dot_dimension_numbers<[1], [0], [0], [1], [0, 0, 1, 1], [], []>} : vector<8x32xf32>, vector<32x32xf32>, vector<8x32xf32> -> vector<8x32xf32>
    %c0_15 = arith.constant 0 : index
    %c0_16 = arith.constant 0 : index
    %26 = vector.load %arg6[%c0_15, %c0_16] : memref<1x32xf32, #tpu.memory_space<vmem>>, vector<1x32xf32>
    %27 = vector.broadcast %26 : vector<1x32xf32> to vector<8x32xf32>
    %28 = arith.addf %25, %27 : vector<8x32xf32>
    %cst_17 = arith.constant 0.000000e+00 : f32
    %29 = vector.broadcast %cst_17 : f32 to vector<8x32xf32>
    %30 = arith.maximumf %28, %29 : vector<8x32xf32>
    %c0_18 = arith.constant 0 : index
    %c0_19 = arith.constant 0 : index
    %31 = vector.load %arg7[%c0_18, %c0_19] : memref<32x16xf32, #tpu.memory_space<vmem>>, vector<32x16xf32>
    %cst_20 = arith.constant dense<0.000000e+00> : vector<8x16xf32>
    %32 = tpu.matmul %30, %31, %cst_20 {dimension_numbers = #tpu.dot_dimension_numbers<[1], [0], [0], [1], [0, 0, 1, 1], [], []>} : vector<8x32xf32>, vector<32x16xf32>, vector<8x16xf32> -> vector<8x16xf32>
    %c0_21 = arith.constant 0 : index
    %c0_22 = arith.constant 0 : index
    %33 = vector.load %arg8[%c0_21, %c0_22] : memref<1x16xf32, #tpu.memory_space<vmem>>, vector<1x16xf32>
    %34 = vector.broadcast %33 : vector<1x16xf32> to vector<8x16xf32>
    %35 = arith.addf %32, %34 : vector<8x16xf32>
    %36 = tpu.iota {dimensions = array<i32: 1>} : vector<2x8xi32>
    %37 = tpu.iota {dimensions = array<i32: 0>} : vector<2x8xi32>
    %c4_i32 = arith.constant 4 : i32
    %38 = vector.broadcast %c4_i32 : i32 to vector<2x8xi32>
    %39 = arith.muli %37, %38 : vector<2x8xi32>
    %40 = arith.cmpi sge, %36, %39 : vector<2x8xi32>
    %c1_i32_23 = arith.constant 1 : i32
    %41 = vector.broadcast %c1_i32_23 : i32 to vector<2x8xi32>
    %42 = arith.addi %37, %41 : vector<2x8xi32>
    %c4_i32_24 = arith.constant 4 : i32
    %43 = vector.broadcast %c4_i32_24 : i32 to vector<2x8xi32>
    %44 = arith.muli %42, %43 : vector<2x8xi32>
    %45 = arith.cmpi slt, %36, %44 : vector<2x8xi32>
    %46 = arith.andi %40, %45 : vector<2x8xi1>
    %cst_25 = arith.constant 2.500000e-01 : f32
    %cst_26 = arith.constant 0.000000e+00 : f32
    %47 = vector.broadcast %cst_25 : f32 to vector<2x8xf32>
    %48 = vector.broadcast %cst_26 : f32 to vector<2x8xf32>
    %49 = arith.select %46, %47, %48 : vector<2x8xi1>, vector<2x8xf32>
    %cst_27 = arith.constant dense<0.000000e+00> : vector<2x16xf32>
    %50 = tpu.matmul %49, %35, %cst_27 {dimension_numbers = #tpu.dot_dimension_numbers<[1], [0], [0], [1], [0, 0, 1, 1], [], []>} : vector<2x8xf32>, vector<8x16xf32>, vector<2x16xf32> -> vector<2x16xf32>
    %c0_28 = arith.constant 0 : index
    %c0_29 = arith.constant 0 : index
    %51 = vector.load %arg9[%c0_28, %c0_29] : memref<32x32xf32, #tpu.memory_space<vmem>>, vector<32x32xf32>
    %52 = vector.extract_strided_slice %51 {offsets = [0, 0], sizes = [16, 32], strides = [1, 1]} : vector<32x32xf32> to vector<16x32xf32>
    %cst_30 = arith.constant dense<0.000000e+00> : vector<2x32xf32>
    %53 = tpu.matmul %22, %52, %cst_30 {dimension_numbers = #tpu.dot_dimension_numbers<[1], [0], [0], [1], [0, 0, 1, 1], [], []>} : vector<2x16xf32>, vector<16x32xf32>, vector<2x32xf32> -> vector<2x32xf32>
    %54 = vector.extract_strided_slice %51 {offsets = [16, 0], sizes = [16, 32], strides = [1, 1]} : vector<32x32xf32> to vector<16x32xf32>
    %cst_31 = arith.constant dense<0.000000e+00> : vector<2x32xf32>
    %55 = tpu.matmul %50, %54, %cst_31 {dimension_numbers = #tpu.dot_dimension_numbers<[1], [0], [0], [1], [0, 0, 1, 1], [], []>} : vector<2x16xf32>, vector<16x32xf32>, vector<2x32xf32> -> vector<2x32xf32>
    %56 = arith.addf %53, %55 : vector<2x32xf32>
    %c0_32 = arith.constant 0 : index
    %c0_33 = arith.constant 0 : index
    %57 = vector.load %arg10[%c0_32, %c0_33] : memref<1x32xf32, #tpu.memory_space<vmem>>, vector<1x32xf32>
    %58 = vector.broadcast %57 : vector<1x32xf32> to vector<2x32xf32>
    %59 = arith.addf %56, %58 : vector<2x32xf32>
    %c0_34 = arith.constant 0 : index
    %c0_35 = arith.constant 0 : index
    %60 = vector.load %arg13[%c0_34, %c0_35] : memref<1x128xf32, #tpu.memory_space<vmem>>, vector<1x128xf32>
    %c0_36 = arith.constant 0 : index
    %c0_37 = arith.constant 0 : index
    %61 = vector.load %arg2[%c0_36, %c0_37] : memref<2x1xf32, #tpu.memory_space<vmem>>, vector<2x1xf32>
    %c0_38 = arith.constant 0 : index
    %c0_39 = arith.constant 0 : index
    %62 = vector.load %arg12[%c0_38, %c0_39] : memref<1x128xf32, #tpu.memory_space<vmem>>, vector<1x128xf32>
    %63 = vector.broadcast %61 : vector<2x1xf32> to vector<2x128xf32>
    %64 = vector.broadcast %62 : vector<1x128xf32> to vector<2x128xf32>
    %65 = arith.mulf %63, %64 : vector<2x128xf32>
    %66 = vector.broadcast %60 : vector<1x128xf32> to vector<2x128xf32>
    %67 = arith.addf %66, %65 : vector<2x128xf32>
    %c0_40 = arith.constant 0 : index
    %c0_41 = arith.constant 0 : index
    %68 = vector.load %arg11[%c0_40, %c0_41] : memref<32x128xf32, #tpu.memory_space<vmem>>, vector<32x128xf32>
    %cst_42 = arith.constant dense<0.000000e+00> : vector<2x128xf32>
    %69 = tpu.matmul %59, %68, %cst_42 {dimension_numbers = #tpu.dot_dimension_numbers<[1], [0], [0], [1], [0, 0, 1, 1], [], []>} : vector<2x32xf32>, vector<32x128xf32>, vector<2x128xf32> -> vector<2x128xf32>
    %70 = arith.addf %67, %69 : vector<2x128xf32>
    %c0_43 = arith.constant 0 : index
    %c0_44 = arith.constant 0 : index
    %71 = vector.load %arg14[%c0_43, %c0_44] : memref<2x128xf32, #tpu.memory_space<vmem>>, vector<2x128xf32>
    tpu.vector_store %arg14[%c0_43, %c0_44], %70 {strides = array<i32>} : memref<2x128xf32, #tpu.memory_space<vmem>>, vector<2x128xf32>,
    return
  }
}

</mosaic_0001>

<bundles_post_ra>
// kernel: occupancy_flow_forward.2
= control target key start
LH: loop header
LB: loop body
LE: loop exit
PB: predicated region body
PF: predicated region fallthrough
CT: control target
= control target key end

     0   :  { %vm64_vm0 = vcmask 392192   ;;  %v948_v13 = vmov 0.0|0.0   ;;  %vm949_vm1 = vmmov 0   ;;  %v950_v14 = vmov 0.0   ;;  %s1182_s3 = inlined_call_operand.vmem [shape: f32[48,16], index: 3, kind: input, shape index: {}]   ;;  %s1183_s0 = inlined_call_operand.vmem [shape: f32[32,48], index: 0, kind: input, shape index: {}]   ;;  %s1184_s4 = inlined_call_operand.vmem [shape: f32[1,16], index: 4, kind: input, shape index: {}]   ;;  %s1185_s5 = inlined_call_operand.vmem [shape: f32[32,32], index: 5, kind: input, shape index: {}]   ;;  %s1186_s1 = inlined_call_operand.vmem [shape: f32[8,32], index: 1, kind: input, shape index: {}]   ;;  %s1187_s7 = inlined_call_operand.vmem [shape: f32[32,16], index: 7, kind: input, shape index: {}]   ;;  %s1188_s6 = inlined_call_operand.vmem [shape: f32[1,32], index: 6, kind: input, shape index: {}]   ;;  %s1189_s8 = inlined_call_operand.vmem [shape: f32[1,16], index: 8, kind: input, shape index: {}]   ;;  %s1190_s9 = inlined_call_operand.vmem [shape: f32[32,32], index: 9, kind: input, shape index: {}]   ;;  %s1191_s11 = inlined_call_operand.vmem [shape: f32[32,128], index: 11, kind: input, shape index: {}]   ;;  %s1192_s2 = inlined_call_operand.vmem [shape: f32[2,1], index: 2, kind: input, shape index: {}]   ;;  %s1193_s10 = inlined_call_operand.vmem [shape: f32[1,32], index: 10, kind: input, shape index: {}]   ;;  %s1194_s12 = inlined_call_operand.vmem [shape: f32[1,128], index: 12, kind: input, shape index: {}]   ;;  %s1195_s13 = inlined_call_operand.vmem [shape: f32[1,128], index: 13, kind: input, shape index: {}]   ;;  %s1196_s14 = inlined_call_operand.vmem [shape: f32[2,128], index: 14, kind: output, shape index: {}]  }
   0x1   :  { %v51_v0 = vld [vmem:[%s1182_s3] sm:$0xff]  ;;  %v52_v1 = vld [vmem:[%s1182_s3 + $0x8] sm:$0xff]  ;;  %v53_v2 = vld [vmem:[%s1182_s3 + $0x10] sm:$0xff]  ;;  %913 = vmatprep.subr.bf16.mxu1 %v948_v13  ;;  %846 = vmatprep.mubr.msk.f32.mxu1 %vm949_vm1, %v950_v14  ;;  %v166_v15 = vlaneseq  ;;  %vm177_vm5 = vcmask 261120   ;;  %vm427_vm9 = vcmask 64512   ;;  %vm505_vm10 = vcmask 130048  }
   0x2   :  { %v901_v3 = vpack.c.bf16 %v52_v1, %v51_v0  ;;  %v54_v4 = vld [vmem:[%s1182_s3 + $0x18] sm:$0xff]  ;;  %v55_v6 = vld [vmem:[%s1182_s3 + $0x20] sm:$0xff]  ;;  %v56_v7 = vld [vmem:[%s1182_s3 + $0x28] sm:$0xff] }
   0x3   :  { %v905_v5 = vpack.c.bf16 %v54_v4, %v53_v2  ;;  %v47_v8 = vld [vmem:[%s1183_s0] sm:$0xff]  ;;  %v909_v9 = vpack.c.bf16 %v56_v7, %v55_v6  ;;  %v48_v10 = vld [vmem:[%s1183_s0 + $0x8] sm:$0xff]  ;;  %v49_v11 = vld [vmem:[%s1183_s0 + $0x10] sm:$0xff]  ;;  %v1067_v16 = vshrl.u32 %v166_v15, 7  ;;  %v1075_v23 = vand.u32 127, %v166_v15 }
   0x4   :  { %902 = vmatprep.subr.bf16.mxu0 %v901_v3  ;;  %832 = vmatprep.mubr.msk.f32.mxu0 %vm64_vm0, %v47_v8  ;;  %v50_v12 = vld [vmem:[%s1183_s0 + $0x18] sm:$0xff]  ;;  %v765_v17 = vld [vmem:[%s1184_s4] ss:$0 sm:$0xff]  ;;  %v253_v36 = vld [vmem:[%s1185_s5 + $0x8] sm:$0xff]  ;;  %v951_v15 = vmov 0  }
   0x5   :  { %904 = vmatpush3.bf16.msra.mxu0 %v901_v3  ;;  %v1073_v18 = vadd.s32 1, %v1067_v16  ;;  %v170_v24 = vmul.u32 16, %v1067_v16  ;;  %v252_v35 = vld [vmem:[%s1185_s5] sm:$0xff]  ;;  %v254_v40 = vld [vmem:[%s1185_s5 + $0x10] sm:$0xff]  ;;  %v255_v41 = vld [vmem:[%s1185_s5 + $0x18] sm:$0xff]  ;;  %v421_v57 = vmul.u32 4, %v1067_v16  ;;  %947 = vset.pattern.permute.xlu0 %v951_v15 }
   0x6   :  { %906 = vmatprep.subr.bf16.mxu0 %v905_v5  ;;  %v920_v39 = vpack.c.bf16 %v253_v36, %v252_v35  ;;  %v923_v42 = vpack.c.bf16 %v255_v41, %v254_v40  ;;  %v251_v43 = vld [vmem:[%s1186_s1] sm:$0xff]  ;;  %v338_v45 = vld [vmem:[%s1187_s7 + $0x8] sm:$0xff]  ;;  %v339_v47 = vld [vmem:[%s1187_s7 + $0x10] sm:$0xff] }
   0x7   :  { %v173_v25 = vmul.u32 16, %v1073_v18  ;;  %vm171_vm2 = vcmp.ge.s32.totalorder %v1075_v23, %v170_v24  ;;  %v337_v44 = vld [vmem:[%s1187_s7] sm:$0xff]  ;;  %v340_v48 = vld [vmem:[%s1187_s7 + $0x18] sm:$0xff]  ;;  %v423_v58 = vmul.u32 4, %v1073_v18  ;;  %vm422_vm6 = vcmp.ge.s32.totalorder %v1075_v23, %v421_v57  ;;  %v503_v60 = vld [vmem:[%s1190_s9 + $0x10] sm:$0xff] }
   0x8   :  { %v926_v46 = vpack.c.bf16 %v338_v45, %v337_v44  ;;  %v929_v49 = vpack.c.bf16 %v340_v48, %v339_v47  ;;  %v771_v52 = vld [vmem:[%s1188_s6] ss:$0 sm:$0xff]  ;;  %v504_v61 = vld [vmem:[%s1190_s9 + $0x18] sm:$0xff]  ;;  %v502_v4 = vld [vmem:[%s1190_s9 + $0x8] sm:$0xff] }
   0x9   :  { %908 = vmatpush3.bf16.msra.mxu0 %v905_v5  ;;  %vm174_vm3 = vcmp.lt.s32.totalorder %v1075_v23, %v173_v25  ;;  %vm424_vm7 = vcmp.lt.s32.totalorder %v1075_v23, %v423_v58  ;;  %v773_v59 = vld [vmem:[%s1189_s8] ss:$0 sm:$0xff]  ;;  %v932_v2 = vpack.c.bf16 %v504_v61, %v503_v60 }
   0xa   :  { %910 = vmatprep.subr.bf16.mxu0 %v909_v9  ;;  %vm175_vm4 = vmand %vm171_vm2, %vm174_vm3  ;;  %v501_v3 = vld [vmem:[%s1190_s9] sm:$0xff] }
   0xb   :  { %v176_v38 = vsel %vm175_vm4, 0.0625, %v950_v14  ;;  %vm425_vm8 = vmand %vm422_vm6, %vm424_vm7  ;;  %v935_v5 = vpack.c.bf16 %v502_v4, %v501_v3  ;;  %v682_v8 = vld [vmem:[%s1191_s11] sm:$0xff] }
   0xc   :  { %v426_v1 = vsel %vm425_vm8, 0.25, %v950_v14  ;;  %v661_v16 = vld [vmem:[%s1192_s2] sm:$0x3] }
   0xd   :  { %912 = vmatpush3.bf16.msra.mxu0 %v909_v9  ;;  %v683_v9 = vld [vmem:[%s1191_s11 + $0x8] sm:$0xff]  ;;  %665 = vperm.xlu0 %947, %v661_v16   ;;  %v779_v23 = vld [vmem:[%s1194_s12] ss:$0 sm:$0xff] }
   0xe   :  { %925 = vmatprep.subr.bf16.mxu0 %v948_v13 }
  0x10   :  { %833 = vmatmul.mubr.msk.f32.vlgmr.msra.gmra.mrb[0].mxu0 %vm64_vm0, %v48_v10  ;;  %v938_v10 = vpack.c.bf16 %v683_v9, %v682_v8 }
  0x11   :  { %835 = vmatprep.mubr.msk.f32.mxu0 %vm64_vm0, %v49_v11  ;;  %927 = vmatpush3.bf16.msra.mxu0 %v926_v46  ;;  %v684_v11 = vld [vmem:[%s1191_s11 + $0x10] sm:$0xff] }
  0x12   :  { %928 = vmatprep.subr.bf16.mxu0 %v948_v13 }
  0x14   :  { %836 = vmatmul.mubr.msk.f32.gmra.mrb[2].mxu0 %vm64_vm0, %v50_v12  ;;  %v685_v12 = vld [vmem:[%s1191_s11 + $0x18] sm:$0xff] }
  0x15   :  { %868 = vmatprep.mubr.msk.f32.mxu0 %vm949_vm1, %v950_v14  ;;  %930 = vmatpush3.bf16.msra.mxu0 %v929_v49 }
  0x16   :  { %937 = vmatprep.subr.bf16.mxu0 %v948_v13 }
  0x8c   :  { %v666_v24 = vpop.permute.xlu0 %665 }
  0x8d   :  { %v674_v25 = vmul.f32 %v779_v23, %v666_v24 }
  0xe3   :  { %v834_v19 = vpop.f32.mrb[0].mxu0 }
  0xe4   :  { %v149_v20 = vadd.f32 %v834_v19, %v765_v17  ;;  %v143_v21 = vpop.f32.mrb[1].mxu0  ;;  %v778_v19 = vld [vmem:[%s1193_s10] ss:$0 sm:$0xff] }
  0xe5   :  { %v144_v22 = vadd.f32 %v765_v17, %v143_v21 }
  0xe6   :  { %v163_v26 = vmax.f32 %v149_v20, 0.0 }
  0xe7   :  { %v162_v27 = vmax.f32 %v144_v22, 0.0  ;;  %v837_v28 = vpop.f32.mrb[2].mxu0 }
  0xe8   :  { %v159_v29 = vadd.f32 %v837_v28, %v765_v17  ;;  %v153_v30 = vpop.f32.mrb[3].mxu0 }
  0xe9   :  { %v154_v31 = vadd.f32 %v765_v17, %v153_v30  ;;  %v914_v32 = vpack.c.bf16 %v163_v26, %v162_v27  ;;  %v780_v26 = vld [vmem:[%s1195_s13] ss:$0 sm:$0xff] }
  0xea   :  { %v165_v33 = vmax.f32 %v159_v29, 0.0  ;;  %v681_v27 = vadd.f32 %v780_v26, %v674_v25 }
  0xeb   :  { %v164_v34 = vmax.f32 %v154_v31, 0.0  ;;  %915 = vmatpush3.bf16.msra.mxu1 %v914_v32 }
  0xec   :  { %916 = vmatprep.subr.bf16.mxu1 %v948_v13 }
  0xed   :  { %v917_v37 = vpack.c.bf16 %v165_v33, %v164_v34 }
  0xef   :  { %918 = vmatpush3.bf16.msra.mxu1 %v917_v37 }
  0xf0   :  { %919 = vmatprep.subr.bf16.mxu1 %v948_v13 }
  0xf2   :  { %847 = vmatmul.mubr.msk.f32.vlgmr.msra.gmra.mrb[0].mxu1 %vm177_vm5, %v176_v38 }
  0xf3   :  { %921 = vmatpush3.bf16.msra.mxu1 %v920_v39  ;;  %857 = vmatprep.mubr.msk.f32.mxu1 %vm949_vm1, %v950_v14 }
  0xf4   :  { %922 = vmatprep.subr.bf16.mxu1 %v948_v13 }
  0xf7   :  { %924 = vmatpush3.bf16.msra.mxu1 %v923_v42 }
  0xf8   :  { %871 = vmatprep.subr.mxu1 %v950_v14 }
  0xfa   :  { %858 = vmatmul.mubr.msk.f32.vlgmr.msra.gmra.mrb[2].mxu1 %vm177_vm5, %v251_v43 }
  0xfb   :  { %873 = vmatprep.mubr.msk.f32.mxu1 %vm949_vm1, %v950_v14 }
 0x1c5   :  { %v247_v50 = vpop.f32.mrb[0].mxu1 }
 0x1c6   :  { %v848_v51 = vpop.f32.mrb[1].mxu1 }
 0x1cd   :  { %v332_v53 = vpop.f32.mrb[2].mxu1 }
 0x1ce   :  { %v333_v54 = vadd.f32 %v771_v52, %v332_v53  ;;  %v859_v55 = vpop.f32.mrb[3].mxu1 }
 0x1d0   :  { %v336_v56 = vmax.f32 %v333_v54, 0.0 }
 0x1d2   :  { %869 = vmatmul.mubr.msk.f32.vlgmr.msra.gmra.mrb[4].mxu0 %vm177_vm5, %v336_v56 }
 0x1d3   :  { %898 = vmatprep.mubr.msk.f32.mxu0 %vm949_vm1, %v950_v14  ;;  %939 = vmatpush3.bf16.msra.mxu0 %v938_v10 }
 0x1d4   :  { %940 = vmatprep.subr.bf16.mxu0 %v948_v13 }
 0x2a5   :  { %v417_v62 = vpop.f32.mrb[4].mxu0 }
 0x2a6   :  { %v418_v63 = vadd.f32 %v773_v59, %v417_v62  ;;  %v870_v0 = vpop.f32.mrb[5].mxu0 }
 0x2a8   :  { %872 = vmatpush3.msra.mxu1 %v418_v63 }
 0x2a9   :  { %874 = vmatmul.mubr.msk.f32.vlgmr.msra.gmra.mrb[4].mxu1 %vm427_vm9, %v426_v1  ;;  %931 = vmatprep.subr.bf16.mxu1 %v948_v13 }
 0x2aa   :  { %933 = vmatpush3.bf16.msra.mxu1 %v932_v2  ;;  %880 = vmatprep.mubr.msk.f32.mxu1 %vm949_vm1, %v950_v14 }
 0x2ab   :  { %934 = vmatprep.subr.bf16.mxu1 %v948_v13 }
 0x37c   :  { %v497_v6 = vpop.f32.mrb[4].mxu1 }
 0x37d   :  { %881 = vmatmul.mubr.msk.f32.vlgmr.msra.gmra.mrb[6].mxu1 %vm505_vm10, %v497_v6  ;;  %v875_v7 = vpop.f32.mrb[5].mxu1 }
 0x37e   :  { %936 = vmatpush3.bf16.msra.mxu1 %v935_v5  ;;  %887 = vmatprep.mubr.msk.f32.mxu1 %vm949_vm1, %v950_v14  ;;  %v941_v14 = vpack.c.bf16 %v685_v12, %v684_v11 }
 0x380   :  { %942 = vmatpush3.bf16.msra.mxu0 %v941_v14 }
 0x381   :  { %888 = vmatmul.mubr.msk.f32.vlgmr.msra.gmra.mrb[8].mxu1 %vm505_vm10, %v247_v50 }
 0x450   :  { %v575_v17 = vpop.f32.mrb[6].mxu1 }
 0x451   :  { %v882_v18 = vpop.f32.mrb[7].mxu1 }
 0x454   :  { %v648_v13 = vpop.f32.mrb[8].mxu1 }
 0x455   :  { %v649_v20 = vadd.f32 %v648_v13, %v575_v17  ;;  %v889_v21 = vpop.f32.mrb[9].mxu1 }
 0x457   :  { %v659_v22 = vadd.f32 %v778_v19, %v649_v20 }
 0x459   :  { %899 = vmatmul.mubr.msk.f32.vlgmr.msra.gmra.mrb[6].mxu0 %vm177_vm5, %v659_v22 }
 0x52c   :  { %v755_v28 = vpop.f32.mrb[6].mxu0 }
 0x52d   :  { %v759_v29 = vadd.f32 %v755_v28, %v681_v27  ;;  %v900_v30 = vpop.f32.mrb[7].mxu0 }
 0x52f   :  { %760 = vst [vmem:[%s1196_s14] sm:$0x3] %v759_v29 }

// kernel: occupancy_flow_forward.3
= control target key start
LH: loop header
LB: loop body
LE: loop exit
PB: predicated region body
PF: predicated region fallthrough
CT: control target
= control target key end

     0   :  { %11 = vsyncpa [#allocation3], 0  ;;  %s4339_s0 = inlined_call_operand.vmem [shape: f32[2,8,256], index: 0, kind: input, shape index: {}]   ;;  %s4340_s1 = inlined_call_operand.vmem [shape: f32[2,128,1], index: 1, kind: input, shape index: {}]   ;;  %s4341_s2 = inlined_call_operand.vmem [shape: f32[144,8], index: 2, kind: input, shape index: {}]   ;;  %s4342_s3 = inlined_call_operand.vmem [shape: f32[128,16], index: 3, kind: input, shape index: {}]   ;;  %s4343_s4 = inlined_call_operand.vmem [shape: bf16[4,128,128], index: 4, kind: input, shape index: {}]   ;;  %s4344_s5 = inlined_call_operand.vmem [shape: f32[4,128,1], index: 5, kind: input, shape index: {}]   ;;  %s4345_s6 = inlined_call_operand.hbm [shape: f32[2,2,256], index: 6, kind: output, shape index: {}]  }
   0x1   :  { %13 = vsyncpa [#allocation3 + $0x1], 0  ;;  %s3483_s21 = smov 0   ;;  %s3485_s22 = smov 0  }
   0x2   :  { %s3487_s23 = smov 0   ;;  %s3489_s24 = smov 0  }
   0x3   :  { %s3491_s25 = smov 0   ;;  %s3493_s26 = smov 0  }
   0x4 LB: > { %s2725_s27 = sadd.s32 4294967295, %s3437_s26   ;;  %s2726_s28 = sadd.s32 4294967294, %s3437_s26   ;;  %s3437_s26 = sphi %s3493_s26, %s19_s26   ;;  %s3433_s25 = sphi %s3491_s25, %s4360_s25   ;;  %s3429_s24 = sphi %s3489_s24, %s4359_s24   ;;  %s3425_s23 = sphi %s3487_s23, %s4358_s23   ;;  %s3421_s22 = sphi %s3485_s22, %s4357_s22   ;;  %s3417_s21 = sphi %s3483_s21, %s4356_s21  }
   0x5   : > { %s31_s29 = sadd.s32 1, %s3433_s25  ;;  %s178_s30 = sadd.s32 1, %s3425_s23 }
   0x6   : > { %p33_p0 = scmp.ge.s32.totalorder %s31_s29, 2  ;;  %p188_p1 = scmp.ne.s32.totalorder %s3425_s23, %s3421_s22 }
   0x7   : > { %p189_p2 = scmp.eq.s32.totalorder %s2725_s27, 1  ;;  %p194_p3 = scmp.ne.s32.totalorder %s3421_s22, %s3417_s21 }
   0x8   : > { %s4362_s29 = smov (%p33_p0, %s31_s29), 0  ;;  %p195_p5 = scmp.eq.s32.totalorder %s2726_s28, 1 }
   0x9   : > { %p3523_p4 = por %p189_p2, %p188_p1  ;;  %s173_s8 = ssub.s32 %s3433_s25, %s4362_s29 }
   0xa   : > { %p2729_p6 = scmp.ge.s32.totalorder %s3437_s26, 1  ;;  %p176_p7 = scmp.eq.s32.totalorder %s173_s8, 0 }
   0xb   : > { %p3530_p8 = por %p195_p5, %p194_p3  ;;  %p246_p9 = scmp.lt.s32.totalorder %s3437_s26, 3 }
   0xc   : > { %s3536_s10 = scalar_select %p176_p7, %s3425_s23, %s178_s30  }
   0xd   : > { %p247_p10 = pnand %p2729_p6, %p246_p9 }
   0xe   : > { %p286_p11 = scmp.lt.s32.totalorder (!%p247_p10), %s3429_s24, 1  ;;  %v3439_v0 = vmov (!%p247_p10), 0.0   ;;  %v304_v1 = vld [vmem:[%s4341_s2] sm:$0xff] (!%p247_p10)  ;;  %vm322_vm0 = vcmask (!%p247_p10), 64512   ;;  %v305_v4 = vld [vmem:[%s4341_s2 + $0x8] sm:$0xff] (!%p247_p10)  ;;  %v306_v5 = vld [vmem:[%s4341_s2 + $0x10] sm:$0xff] (!%p247_p10) }
   0xf   : > { %250 = sbr.rel (%p247_p10) target bundleno = 1795 (0x703), region = 44  ;;  %441 = vmatprep.mubr.f32.mxu0 (!%p247_p10), %v3439_v0  ;;  %v307_v6 = vld [vmem:[%s4341_s2 + $0x18] sm:$0xff] (!%p247_p10)  ;;  %v308_v7 = vld [vmem:[%s4341_s2 + $0x20] sm:$0xff] (!%p247_p10)  ;;  %v309_v8 = vld [vmem:[%s4341_s2 + $0x28] sm:$0xff] (!%p247_p10)  ;;  %v3440_v50 = vmov (!%p247_p10), 683565275  }
  0x10   : > { %v310_v9 = vld [vmem:[%s4341_s2 + $0x30] sm:$0xff] (!%p247_p10)  ;;  %v311_v10 = vld [vmem:[%s4341_s2 + $0x38] sm:$0xff] (!%p247_p10)  ;;  %v312_v11 = vld [vmem:[%s4341_s2 + $0x40] sm:$0xff] (!%p247_p10)  ;;  %v3441_v54 = vmov (!%p247_p10), 2475754826   ;;  %s282_s15 = sand.u32 (!%p247_p10), 1, %s3421_s22  }
  0x11   : > { %v313_v12 = vld [vmem:[%s4341_s2 + $0x48] sm:$0xff] (!%p247_p10)  ;;  %v314_v13 = vld [vmem:[%s4341_s2 + $0x50] sm:$0xff] (!%p247_p10)  ;;  %v315_v14 = vld [vmem:[%s4341_s2 + $0x58] sm:$0xff] (!%p247_p10)  ;;  %v3442_v56 = vmov (!%p247_p10), 2131351028   ;;  %s3447_s30 = smov (!%p247_p10), [#allocation2]  }
  0x12   : > { %v316_v15 = vld [vmem:[%s4341_s2 + $0x60] sm:$0xff] (!%p247_p10)  ;;  %v317_v16 = vld [vmem:[%s4341_s2 + $0x68] sm:$0xff] (!%p247_p10)  ;;  %v318_v17 = vld [vmem:[%s4341_s2 + $0x70] sm:$0xff] (!%p247_p10)  ;;  %v3443_v58 = vmov (!%p247_p10), 2102212464   ;;  %s3363_s8 = sshll.u32 (!%p247_p10), %s3447_s30, 4  ;;  %s3364_s8 = int_to_ptr.vmem [resolvable:$false] %s3363_s8 }
  0x13   : > { %v319_v25 = vld [vmem:[%s4341_s2 + $0x78] sm:$0xff] (!%p247_p10)  ;;  %v320_v35 = vld [vmem:[%s4341_s2 + $0x80] sm:$0xff] (!%p247_p10)  ;;  %v321_v45 = vld [vmem:[%s4341_s2 + $0x88] sm:$0xff] (!%p247_p10)  ;;  %v3444_v60 = vmov (!%p247_p10), 920167782  }
  0x16   : > { %s3541_s11 = scalar_select %p286_p11, %s3429_s24, 1 }
  0x18   : > { %s2919_s12 = sshll.u32 %s3541_s11, 4  ;;  %s2920_s13 = sshll.u32 %s3541_s11, 7 }
  0x19   : > { %s293_s17 = scalar_lea.vmem %s4339_s0, %s2919_s12  ;;  %s3819_s16 = scalar_lea.vmem %s4340_s1, %s2920_s13 }
  0x1a   : > { %v303_v2 = vld [vmem:[%s293_s17 + $0x8] sm:$0xff]  ;;  %v302_v3 = vld [vmem:[%s293_s17] sm:$0xff]  ;;  %s2921_s11 = sshll.u32 %s3429_s24, 6  ;;  %s2621_s24 = scalar_lea.sflag [#allocation3], %s282_s15 }
  0x1b   : > { %377 = vmatprep.subr.mxu0 %v303_v2  ;;  %s4292_s27 = scalar_lea.hbm %s4345_s6, %s2921_s11  ;;  %s3365_s12 = scalar_lea.vmem %s3364_s8, 128 }
  0x1c   : > { %378 = vmatpush1.msra.mxu0 %v302_v3 }
  0x1d   : > { %2735 = vmatmul.mubr.msk.f32.vlgmr.msra.gmra.mrb[0].mxu0 %vm322_vm0, %v304_v1 }
  0x1e   : > { %447 = vmatprep.mubr.f32.mxu0 %v3439_v0 }
  0x21   : > { %2736 = vmatmul.mubr.msk.f32.gmra.mrb[2].mxu0 %vm322_vm0, %v305_v4  ;;  %v3445_v4 = vmov 1326507024  }
  0x22   : > { %453 = vmatprep.mubr.f32.mxu0 %v3439_v0 }
  0x25   : > { %2737 = vmatmul.mubr.msk.f32.gmra.mrb[4].mxu0 %vm322_vm0, %v306_v5 }
  0x26   : > { %459 = vmatprep.mubr.f32.mxu0 %v3439_v0 }
  0x29   : > { %2738 = vmatmul.mubr.msk.f32.gmra.mrb[6].mxu0 %vm322_vm0, %v307_v6 }
  0x2a   : > { %465 = vmatprep.mubr.f32.mxu0 %v3439_v0 }
  0x2d   : > { %2739 = vmatmul.mubr.msk.f32.gmra.mrb[8].mxu0 %vm322_vm0, %v308_v7 }
  0x2e   : > { %471 = vmatprep.mubr.f32.mxu0 %v3439_v0 }
  0x31   : > { %2740 = vmatmul.mubr.msk.f32.gmra.mrb[10].mxu0 %vm322_vm0, %v309_v8 }
  0x32   : > { %477 = vmatprep.mubr.f32.mxu0 %v3439_v0 }
  0x35   : > { %2741 = vmatmul.mubr.msk.f32.gmra.mrb[12].mxu0 %vm322_vm0, %v310_v9 }
  0x36   : > { %483 = vmatprep.mubr.f32.mxu0 %v3439_v0 }
  0x39   : > { %2742 = vmatmul.mubr.msk.f32.gmra.mrb[14].mxu0 %vm322_vm0, %v311_v10 }
  0x3a   : > { %489 = vmatprep.mubr.f32.mxu0 %v3439_v0 }
  0x3d   : > { %2743 = vmatmul.mubr.msk.f32.gmra.mrb[16].mxu0 %vm322_vm0, %v312_v11 }
  0x3e   : > { %495 = vmatprep.mubr.f32.mxu0 %v3439_v0 }
  0x41   : > { %2744 = vmatmul.mubr.msk.f32.gmra.mrb[18].mxu0 %vm322_vm0, %v313_v12 }
  0x42   : > { %501 = vmatprep.mubr.f32.mxu0 %v3439_v0 }
  0x45   : > { %2745 = vmatmul.mubr.msk.f32.gmra.mrb[20].mxu0 %vm322_vm0, %v314_v13 }
  0x46   : > { %507 = vmatprep.mubr.f32.mxu0 %v3439_v0 }
  0x49   : > { %2746 = vmatmul.mubr.msk.f32.gmra.mrb[22].mxu0 %vm322_vm0, %v315_v14 }
  0x4a   : > { %513 = vmatprep.mubr.f32.mxu0 %v3439_v0 }
  0x4d   : > { %2747 = vmatmul.mubr.msk.f32.gmra.mrb[24].mxu0 %vm322_vm0, %v316_v15 }
  0x4e   : > { %519 = vmatprep.mubr.f32.mxu0 %v3439_v0 }
  0x51   : > { %2748 = vmatmul.mubr.msk.f32.gmra.mrb[26].mxu0 %vm322_vm0, %v317_v16 }
  0x52   : > { %525 = vmatprep.mubr.f32.mxu0 %v3439_v0 }
  0x55   : > { %2749 = vmatmul.mubr.msk.f32.gmra.mrb[28].mxu0 %vm322_vm0, %v318_v17 }
  0x56   : > { %531 = vmatprep.mubr.f32.mxu0 %v3439_v0 }
  0x59   : > { %2750 = vmatmul.mubr.msk.f32.gmra.mrb[30].mxu0 %vm322_vm0, %v319_v25 }
  0x5a   : > { %537 = vmatprep.mubr.f32.mxu0 %v3439_v0 }
  0x5d   : > { %2751 = vmatmul.mubr.msk.f32.gmra.mrb[32].mxu0 %vm322_vm0, %v320_v35 }
  0x5e   : > { %543 = vmatprep.mubr.f32.mxu0 %v3439_v0 }
  0x61   : > { %2752 = vmatmul.mubr.msk.f32.gmra.mrb[34].mxu0 %vm322_vm0, %v321_v45 }
  0x62   : > { %1106 = vmatprep.mubr.f32.mxu0 %v3439_v0 }
  0xf0   : > { %v3620_v18 = vpop.f32.mrb[0].mxu0 }
  0xf1   : > { %v561_v19 = vand.u32 2147483647, %v3620_v18  ;;  %v564_v20 = vand.u32 2139095040, %v3620_v18  ;;  %v3624_v21 = vpop.f32.mrb[1].mxu0 }
  0xf2   : > { %v665_v22 = vand.u32 2147483647, %v3624_v21  ;;  %v668_v23 = vand.u32 2139095040, %v3624_v21 }
  0xf3   : > { %v565_v24 = vshrl.u32 %v564_v20, 23  ;;  %v568_v26 = vand.u32 8388607, %v561_v19 }
  0xf4   : > { %v669_v27 = vshrl.u32 %v668_v23, 23  ;;  %v672_v28 = vand.u32 8388607, %v665_v22  ;;  %v449_v29 = vpop.f32.mrb[2].mxu0 }
  0xf5   : > { %v2753_v30 = vadd.s32 4294967169, %v565_v24  ;;  %v3637_v31 = vadd.f32 1.5707964, %v449_v29  ;;  %v3639_v32 = vpop.f32.mrb[3].mxu0  ;;  %v569_v36 = vor.u32 8388608, %v568_v26 }
  0xf6   : > { %v2757_v33 = vadd.s32 4294967169, %v669_v27  ;;  %v673_v37 = vor.u32 8388608, %v672_v28 }
  0xf7   : > { %v571_v34 = vadd.s32 1, %v2753_v30  ;;  %v772_v39 = vand.u32 2139095040, %v3637_v31  ;;  %v3652_v46 = vshll.u32 %v569_v36, 8 }
  0xf8   : > { %v675_v38 = vadd.s32 1, %v2757_v33  ;;  %v3656_v48 = vshll.u32 %v673_v37, 8 }
  0xf9   : > { %vm572_vm1 = vcmp.gt.s32.totalorder %v571_v34, 0  ;;  %v773_v41 = vshrl.u32 %v772_v39, 23 }
  0xfa   : > { %v573_v40 = vsel %vm572_vm1, %v571_v34, 0  ;;  %vm676_vm2 = vcmp.gt.s32.totalorder %v675_v38, 0 }
  0xfb   : > { %v574_v42 = vshrl.u32 %v573_v40, 5  ;;  %v575_v43 = vand.u32 31, %v573_v40  ;;  %v677_v44 = vsel %vm676_vm2, %v675_v38, 0  ;;  %v3659_v53 = vadd.s32 4294967169, %v773_v41 }
  0xfc   : > { %v3654_v47 = vshrl.u32 %v677_v44, 5  ;;  %v679_v52 = vand.u32 31, %v677_v44 }
  0xfd   : > { %v576_v49 = vsub.s32 32, %v575_v43  ;;  %v578_v51 = vshll.u32 %v3440_v50, %v575_v43  ;;  %v581_v55 = vshll.u32 %v3441_v54, %v575_v43  ;;  %v584_v57 = vshll.u32 %v3442_v56, %v575_v43 }
  0xfe   : > { %v587_v59 = vshll.u32 %v3443_v58, %v575_v43  ;;  %v590_v61 = vshll.u32 %v3444_v60, %v575_v43  ;;  %vm593_vm3 = vcmp.lt.s32.totalorder %v574_v42, 1  ;;  %vm594_vm4 = vcmp.lt.s32.totalorder %v574_v42, 2 }
  0xff   : > { %v579_v62 = vshrl.u32 %v3441_v54, %v576_v49  ;;  %v582_v63 = vshrl.u32 %v3442_v56, %v576_v49  ;;  %v585_v1 = vshrl.u32 %v3443_v58, %v576_v49  ;;  %v577_v2 = vshrl.u32 %v3440_v50, %v576_v49 }
 0x100   : > { %v588_v3 = vshrl.u32 %v3444_v60, %v576_v49  ;;  %v591_v5 = vshrl.u32 %v3445_v4, %v576_v49  ;;  %v680_v9 = vsub.s32 32, %v679_v52  ;;  %vm595_vm5 = vcmp.lt.s32.totalorder %v574_v42, 3 }
 0x101   : > { %v580_v6 = vor.u32 %v579_v62, %v578_v51  ;;  %v583_v7 = vor.u32 %v582_v63, %v581_v55  ;;  %v586_v8 = vor.u32 %v585_v1, %v584_v57  ;;  %vm596_vm6 = vcmp.lt.s32.totalorder %v574_v42, 4 }
 0x102   : > { %v589_v10 = vor.u32 %v588_v3, %v587_v59  ;;  %v592_v11 = vor.u32 %v591_v5, %v590_v61  ;;  %v682_v23 = vshll.u32 %v3440_v50, %v679_v52  ;;  %v683_v26 = vshrl.u32 %v3441_v54, %v680_v9 }
 0x103   : > { %v597_v12 = vsel %vm593_vm3, %v577_v2, %v580_v6  ;;  %v598_v13 = vsel %vm596_vm6, %v586_v8, 2102212464  ;;  %v601_v14 = vsel %vm593_vm3, %v580_v6, %v583_v7  ;;  %v605_v15 = vsel %vm593_vm3, %v583_v7, %v586_v8 }
 0x104   : > { %v599_v16 = vsel %vm595_vm5, %v583_v7, %v598_v13  ;;  %v602_v17 = vsel %vm596_vm6, %v589_v10, 920167782  ;;  %v606_v20 = vsel %vm596_vm6, %v592_v11, 1326507024  ;;  %v685_v27 = vshll.u32 %v3441_v54, %v679_v52 }
 0x105   : > { %v603_v24 = vsel %vm595_vm5, %v586_v8, %v602_v17  ;;  %v607_v25 = vsel %vm595_vm5, %v589_v10, %v606_v20  ;;  %v600_v28 = vsel %vm594_vm4, %v597_v12, %v599_v16  ;;  %v686_v33 = vshrl.u32 %v3442_v56, %v680_v9 }
 0x106   : > { %v604_v29 = vsel %vm594_vm4, %v601_v14, %v603_v24  ;;  %v608_v30 = vsel %vm594_vm4, %v605_v15, %v607_v25  ;;  %v684_v38 = vor.u32 %v683_v26, %v682_v23  ;;  %v688_v40 = vshll.u32 %v3442_v56, %v679_v52 }
 0x107   : > { %v3684_v34 = vmul.u32.u64.low %v3652_v46, %v608_v30  ;;  %v3685_v35 = vmul.u32.u64.high %v3652_v46, %v608_v30, %v3684_v34  ;;  %v3688_v36 = vmul.u32.u64.low %v3652_v46, %v604_v29  ;;  %v3689_v37 = vmul.u32.u64.high %v3652_v46, %v604_v29, %v3688_v36 }
 0x108   : > { %v687_v39 = vor.u32 %v686_v33, %v685_v27  ;;  %v689_v41 = vshrl.u32 %v3443_v58, %v680_v9  ;;  %v681_v42 = vshrl.u32 %v3440_v50, %v680_v9  ;;  %v691_v43 = vshll.u32 %v3443_v58, %v679_v52 }
 0x109   : > { %v692_v44 = vshrl.u32 %v3444_v60, %v680_v9  ;;  %v695_v45 = vshrl.u32 %v3445_v4, %v680_v9  ;;  %v616_v49 = vmul.u32 %v3652_v46, %v600_v28  ;;  %v694_v55 = vshll.u32 %v3444_v60, %v679_v52 }
 0x10a   : > { %v690_v51 = vor.u32 %v689_v41, %v688_v40  ;;  %vm697_vm7 = vcmp.lt.s32.totalorder %v3654_v47, 1  ;;  %vm618_vm8 = vc.u32 %v3685_v35, %v3688_v36  ;;  %v619_v57 = vadd.s32 1, %v3689_v37 }
 0x10b   : > { %v693_v59 = vor.u32 %v692_v44, %v691_v43  ;;  %vm698_vm9 = vcmp.lt.s32.totalorder %v3654_v47, 2  ;;  %v696_v61 = vor.u32 %v695_v45, %v694_v55  ;;  %vm699_vm10 = vcmp.lt.s32.totalorder %v3654_v47, 3 }
 0x10c   : > { %vm700_vm11 = vcmp.lt.s32.totalorder %v3654_v47, 4  ;;  %v705_v62 = vsel %vm697_vm7, %v684_v38, %v687_v39  ;;  %v620_v46 = vsel %vm618_vm8, %v619_v57, %v3689_v37  ;;  %v709_v1 = vsel %vm697_vm7, %v687_v39, %v690_v51 }
 0x10d   : > { %v702_v63 = vsel %vm700_vm11, %v690_v51, 2102212464  ;;  %v706_v52 = vsel %vm700_vm11, %v693_v59, 920167782  ;;  %v621_v2 = vadd.s32 %v620_v46, %v616_v49  ;;  %v701_v3 = vsel %vm697_vm7, %v681_v42, %v684_v38 }
 0x10e   : > { %v707_v5 = vsel %vm699_vm10, %v690_v51, %v706_v52  ;;  %v710_v6 = vsel %vm700_vm11, %v696_v61, 1326507024  ;;  %v703_v7 = vsel %vm699_vm10, %v687_v39, %v702_v63  ;;  %v779_v10 = vadd.s32 1, %v3659_v53 }
 0x10f   : > { %v708_v8 = vsel %vm698_vm9, %v705_v62, %v707_v5  ;;  %v711_v9 = vsel %vm699_vm10, %v693_v59, %v710_v6  ;;  %v622_v11 = vadd.s32 536870912, %v621_v2  ;;  %v704_v20 = vsel %vm698_vm9, %v701_v3, %v703_v7 }
 0x110   : > { %v712_v12 = vsel %vm698_vm9, %v709_v1, %v711_v9  ;;  %v3714_v13 = vmul.u32.u64.low %v3656_v48, %v708_v8  ;;  %v3715_v14 = vmul.u32.u64.high %v3656_v48, %v708_v8, %v3714_v13  ;;  %vm780_vm12 = vcmp.gt.s32.totalorder %v779_v10, 0 }
 0x111   : > { %v3719_v15 = vmul.u32.u64.low %v3656_v48, %v712_v12  ;;  %v3720_v16 = vmul.u32.u64.high %v3656_v48, %v712_v12, %v3719_v15  ;;  %v3722_v17 = vshrl.u32 %v622_v11, 30  ;;  %v781_v53 = vsel %vm780_vm12, %v779_v10, 0 }
 0x112   : > { %v783_v23 = vand.u32 31, %v781_v53  ;;  %v723_v24 = vadd.s32 1, %v3715_v14  ;;  %v769_v25 = vand.u32 2147483647, %v3637_v31  ;;  %v3729_v26 = vadd.f32 1.5707964, %v3639_v32 }
 0x113   : > { %v720_v27 = vmul.u32 %v3656_v48, %v704_v20  ;;  %vm722_vm13 = vc.u32 %v3720_v16, %v3714_v13  ;;  %v624_v29 = vshll.u32 %v3722_v17, 30  ;;  %v782_v37 = vshrl.u32 %v781_v53, 5 }
 0x114   : > { %v784_v28 = vsub.s32 32, %v783_v23  ;;  %v724_v47 = vsel %vm722_vm13, %v723_v24, %v3715_v14  ;;  %v776_v34 = vand.u32 8388607, %v769_v25  ;;  %v876_v38 = vand.u32 2139095040, %v3729_v26 }
 0x115   : > { %v725_v30 = vadd.s32 %v724_v47, %v720_v27  ;;  %v786_v39 = vshll.u32 %v3440_v50, %v783_v23  ;;  %v789_v40 = vshll.u32 %v3441_v54, %v783_v23  ;;  %v3744_v42 = vsub.s32 %v621_v2, %v624_v29 }
 0x116   : > { %v787_v33 = vshrl.u32 %v3441_v54, %v784_v28  ;;  %v790_v32 = vshrl.u32 %v3442_v56, %v784_v28  ;;  %v793_v41 = vshrl.u32 %v3443_v58, %v784_v28  ;;  %v792_v43 = vshll.u32 %v3442_v56, %v783_v23 }
 0x117   : > { %v726_v48 = vadd.s32 536870912, %v725_v30  ;;  %v795_v44 = vshll.u32 %v3443_v58, %v783_v23  ;;  %v796_v45 = vshrl.u32 %v3444_v60, %v784_v28  ;;  %v799_v57 = vshrl.u32 %v3445_v4, %v784_v28 }
 0x118   : > { %v788_v51 = vor.u32 %v787_v33, %v786_v39  ;;  %v791_v55 = vor.u32 %v790_v32, %v789_v40  ;;  %v794_v59 = vor.u32 %v793_v41, %v792_v43  ;;  %v777_v46 = vor.u32 8388608, %v776_v34 }
 0x119   : > { %v3749_v49 = vshrl.u32 %v726_v48, 30  ;;  %v797_v61 = vor.u32 %v796_v45, %v795_v44  ;;  %v798_v63 = vshll.u32 %v3444_v60, %v783_v23  ;;  %v627_v52 = vsub.s32 0, %v3744_v42 }
 0x11a   : > { %vm801_vm14 = vcmp.lt.s32.totalorder %v782_v37, 1  ;;  %vm804_vm15 = vcmp.lt.s32.totalorder %v782_v37, 4  ;;  %v877_v1 = vshrl.u32 %v876_v38, 23  ;;  %vm803_vm0 = vcmp.lt.s32.totalorder %v782_v37, 3 }
 0x11b   : > { %v728_v62 = vshll.u32 %v3749_v49, 30  ;;  %v800_v2 = vor.u32 %v799_v57, %v798_v63  ;;  %v809_v3 = vsel %vm801_vm14, %v788_v51, %v791_v55  ;;  %v810_v5 = vsel %vm804_vm15, %v797_v61, 920167782 }
 0x11c   : > { %v811_v7 = vsel %vm803_vm0, %v794_v59, %v810_v5  ;;  %vm802_vm1 = vcmp.lt.s32.totalorder %v782_v37, 2  ;;  %v806_v8 = vsel %vm804_vm15, %v794_v59, 2102212464  ;;  %v785_v9 = vshrl.u32 %v3440_v50, %v784_v28 }
 0x11d   : > { %v3756_v6 = vsub.s32 %v725_v30, %v728_v62  ;;  %v812_v10 = vsel %vm802_vm1, %v809_v3, %v811_v7  ;;  %v817_v11 = vshll.u32 %v777_v46, 8  ;;  %v2754_v12 = vmin.u32 %v627_v52, %v3744_v42 }
 0x11e   : > { %v813_v14 = vsel %vm801_vm14, %v791_v55, %v794_v59  ;;  %v814_v15 = vsel %vm804_vm15, %v800_v2, 1326507024  ;;  %v2765_v20 = vadd.s32 4294967169, %v877_v1  ;;  %v805_v23 = vsel %vm801_vm14, %v785_v9, %v788_v51 }
 0x11f   : > { %v731_v53 = vsub.s32 0, %v3756_v6  ;;  %v807_v24 = vsel %vm803_vm0, %v791_v55, %v806_v8  ;;  %v815_v27 = vsel %vm803_vm0, %v797_v61, %v814_v15  ;;  %v629_v38 = vclz %v2754_v12 }
 0x120   : > { %v816_v29 = vsel %vm802_vm1, %v813_v14, %v815_v27  ;;  %v3768_v28 = vmul.u32.u64.low %v817_v11, %v812_v10  ;;  %v3769_v47 = vmul.u32.u64.high %v817_v11, %v812_v10, %v3768_v28  ;;  %v808_v34 = vsel %vm802_vm1, %v805_v23, %v807_v24 }
 0x121   : > { %v3772_v30 = vmul.u32.u64.low %v817_v11, %v816_v29  ;;  %v3773_v33 = vmul.u32.u64.high %v817_v11, %v816_v29, %v3772_v30  ;;  %v883_v32 = vadd.s32 1, %v2765_v20  ;;  %v2758_v48 = vmin.u32 %v731_v53, %v3756_v6 }
 0x122   : > { %v827_v39 = vadd.s32 1, %v3769_v47  ;;  %v824_v40 = vmul.u32 %v817_v11, %v808_v34  ;;  %v2755_v43 = vadd.s32 4294967294, %v629_v38  ;;  %v873_v37 = vand.u32 2147483647, %v3729_v26 }
 0x123   : > { %vm884_vm2 = vcmp.gt.s32.totalorder %v883_v32, 0  ;;  %vm826_vm3 = vc.u32 %v3773_v33, %v3768_v28  ;;  %v733_v44 = vclz %v2758_v48  ;;  %vm563_vm12 = vcmp.lt.s32.totalorder %v3620_v18, 0 }
 0x124   : > { %v828_v41 = vsel %vm826_vm3, %v827_v39, %v3769_v47  ;;  %v885_v51 = vsel %vm884_vm2, %v883_v32, 0  ;;  %vm2756_vm4 = vcmp.lt.s32.totalorder %v2755_v43, 0  ;;  %v880_v46 = vand.u32 8388607, %v873_v37 }
 0x125   : > { %v829_v45 = vadd.s32 %v828_v41, %v824_v40  ;;  %v887_v55 = vand.u32 31, %v885_v51  ;;  %v2759_v61 = vadd.s32 4294967294, %v733_v44  ;;  %v3788_v1 = vsel %vm2756_vm4, 0, %v2755_v43 }
 0x126   : > { %v881_v10 = vor.u32 8388608, %v880_v46  ;;  %v886_v11 = vshrl.u32 %v885_v51, 5  ;;  %vm667_vm14 = vcmp.lt.s32.totalorder %v3624_v21, 0  ;;  %vm771_vm15 = vcmp.lt.s32.totalorder %v3637_v31, 0 }
 0x127   : > { %v830_v57 = vadd.s32 536870912, %v829_v45  ;;  %v888_v59 = vsub.s32 32, %v887_v55  ;;  %v890_v2 = vshll.u32 %v3440_v50, %v887_v55  ;;  %vm2760_vm5 = vcmp.lt.s32.totalorder %v2759_v61, 0 }
 0x128   : > { %v893_v8 = vshll.u32 %v3441_v54, %v887_v55  ;;  %v896_v9 = vshll.u32 %v3442_v56, %v887_v55  ;;  %v899_v14 = vshll.u32 %v3443_v58, %v887_v55  ;;  %v3800_v24 = vsel %vm2760_vm5, 0, %v2759_v61 }
 0x129   : > { %v3782_v62 = vshrl.u32 %v830_v57, 30  ;;  %v891_v52 = vshrl.u32 %v3441_v54, %v888_v59  ;;  %v894_v3 = vshrl.u32 %v3442_v56, %v888_v59  ;;  %v897_v5 = vshrl.u32 %v3443_v58, %v888_v59 }
 0x12a   : > { %v900_v23 = vshrl.u32 %v3444_v60, %v888_v59  ;;  %v902_v27 = vshll.u32 %v3444_v60, %v887_v55  ;;  %v903_v29 = vshrl.u32 %v3445_v4, %v888_v59  ;;  %v637_v54 = vsub.s32 4294967266, %v3788_v1 }
 0x12b   : > { %v832_v63 = vshll.u32 %v3782_v62, 30  ;;  %v892_v12 = vor.u32 %v891_v52, %v890_v2  ;;  %v895_v20 = vor.u32 %v894_v3, %v893_v8  ;;  %v898_v53 = vor.u32 %v897_v5, %v896_v9 }
 0x12c   : > { %v901_v47 = vor.u32 %v900_v23, %v899_v14  ;;  %v904_v30 = vor.u32 %v903_v29, %v902_v27  ;;  %vm905_vm6 = vcmp.lt.s32.totalorder %v886_v11, 1  ;;  %vm908_vm7 = vcmp.lt.s32.totalorder %v886_v11, 4  ;;  %v1235_v23 = vld [vmem:[%s3819_s16] sm:$0xff]  ;;  %v1237_v27 = vld [vmem:[%s3819_s16 + $0x10] sm:$0xff] }
 0x12d   : > { %v3793_v7 = vsub.s32 %v829_v45, %v832_v63  ;;  %v921_v58 = vshll.u32 %v881_v10, 8  ;;  %v741_v34 = vsub.s32 4294967266, %v3800_v24  ;;  %v910_v38 = vsel %vm908_vm7, %v898_v53, 2102212464 }
 0x12e   : > { %v913_v48 = vsel %vm905_vm6, %v892_v12, %v895_v20  ;;  %v889_v39 = vshrl.u32 %v3440_v50, %v888_v59  ;;  %vm907_vm8 = vcmp.lt.s32.totalorder %v886_v11, 3  ;;  %v914_v60 = vsel %vm908_vm7, %v901_v47, 920167782 }
 0x12f   : > { %v835_v15 = vsub.s32 0, %v3793_v7  ;;  %v917_v4 = vsel %vm905_vm6, %v895_v20, %v898_v53  ;;  %vm906_vm9 = vcmp.lt.s32.totalorder %v886_v11, 2  ;;  %v915_v41 = vsel %vm907_vm8, %v898_v53, %v914_v60 }
 0x130   : > { %v918_v43 = vsel %vm908_vm7, %v904_v30, 1326507024  ;;  %v909_v44 = vsel %vm905_vm6, %v889_v39, %v892_v12  ;;  %v911_v45 = vsel %vm907_vm8, %v895_v20, %v910_v38  ;;  %v916_v51 = vsel %vm906_vm9, %v913_v48, %v915_v41  ;;  %v1236_v38 = vld [vmem:[%s3819_s16 + $0x8] sm:$0xff]  ;;  %v1238_v48 = vld [vmem:[%s3819_s16 + $0x18] sm:$0xff] }
 0x131   : > { %v2762_v56 = vmin.u32 %v835_v15, %v3793_v7  ;;  %v919_v55 = vsel %vm907_vm8, %v901_v47, %v918_v43  ;;  %v3809_v61 = vmul.u32.u64.low %v921_v58, %v916_v51  ;;  %v3810_v46 = vmul.u32.u64.high %v921_v58, %v916_v51, %v3809_v61 }
 0x132   : > { %v920_v57 = vsel %vm906_vm9, %v917_v4, %v919_v55  ;;  %v638_v52 = vadd.s32 127, %v637_v54  ;;  %v912_v3 = vsel %vm906_vm9, %v909_v44, %v911_v45  ;;  %v742_v5 = vadd.s32 127, %v741_v34  ;;  %v1239_v44 = vld [vmem:[%s3819_s16 + $0x20] sm:$0xff]  ;;  %v1240_v45 = vld [vmem:[%s3819_s16 + $0x28] sm:$0xff] }
 0x133   : > { %v837_v32 = vclz %v2762_v56  ;;  %v3813_v50 = vmul.u32.u64.low %v921_v58, %v920_v57  ;;  %v3814_v59 = vmul.u32.u64.high %v921_v58, %v920_v57, %v3813_v50  ;;  %v633_v8 = vsub.s32 32, %v3788_v1 }
 0x134   : > { %v931_v10 = vadd.s32 1, %v3810_v46  ;;  %v737_v11 = vsub.s32 32, %v3800_v24  ;;  %v928_v12 = vmul.u32 %v921_v58, %v912_v3  ;;  %v617_v14 = vadd.s32 %v3688_v36, %v3685_v35  ;;  %v1241_v50 = vld [vmem:[%s3819_s16 + $0x30] sm:$0xff] }
 0x135   : > { %v2763_v40 = vadd.s32 4294967294, %v837_v32  ;;  %vm930_vm11 = vc.u32 %v3814_v59, %v3809_v61  ;;  %v639_v15 = vshll.u32 %v638_v52, 23  ;;  %v721_v29 = vadd.s32 %v3714_v13, %v3720_v16  ;;  %v1242_v52 = vld [vmem:[%s3819_s16 + $0x38] sm:$0xff] }
 0x136   : > { %v932_v53 = vsel %vm930_vm11, %v931_v10, %v3810_v46  ;;  %v743_v54 = vshll.u32 %v742_v5, 23  ;;  %v635_v47 = vshrl.u32 %v617_v14, %v633_v8  ;;  %v825_v30 = vadd.s32 %v3768_v28, %v3773_v33  ;;  %v1243_v10 = vld [vmem:[%s3819_s16 + $0x40] sm:$0xff] }
 0x137   : > { %vm2764_vm10 = vcmp.lt.s32.totalorder %v2763_v40, 0  ;;  %v933_v56 = vadd.s32 %v932_v53, %v928_v12  ;;  %v3446_v34 = vmov 0   ;;  %v739_v35 = vshrl.u32 %v721_v29, %v737_v11  ;;  %v1244_v11 = vld [vmem:[%s3819_s16 + $0x48] sm:$0xff] }
 0x138   : > { %v840_v63 = vsel %vm2764_vm10, 0, %v2763_v40  ;;  %3053 = vset.pattern.permute.xlu0 %v3446_v34  ;;  %3054 = vset.pattern.permute.xlu1 %v3446_v34  ;;  %v634_v13 = vshll.u32 %v3744_v42, %v3788_v1  ;;  %v640_v16 = vor.u32 4788187, %v639_v15  ;;  %v738_v28 = vshll.u32 %v3756_v6, %v3800_v24 }
 0x139   : > { %v845_v2 = vsub.s32 4294967266, %v840_v63  ;;  %v841_v20 = vsub.s32 32, %v840_v63  ;;  %v934_v36 = vadd.s32 536870912, %v933_v56  ;;  %1253 = vperm.xlu0 %3053, %v1235_v23   ;;  %1263 = vperm.xlu1 %3054, %v1237_v27   ;;  %v744_v33 = vor.u32 4788187, %v743_v54  ;;  %v1245_v23 = vld [vmem:[%s3819_s16 + $0x50] sm:$0xff] }
 0x13a   : > { %1603 = vmatprep.mubr.bf16.mxu1 %v3446_v34  ;;  %v636_v60 = vor.u32 %v635_v47, %v634_v13  ;;  %v842_v4 = vshll.u32 %v3793_v7, %v840_v63  ;;  %v740_v41 = vor.u32 %v739_v35, %v738_v28  ;;  %v641_v1 = vand.u32 2147483647, %v640_v16  ;;  %v1246_v27 = vld [vmem:[%s3819_s16 + $0x58] sm:$0xff]  ;;  %v1247_v16 = vld [vmem:[%s3819_s16 + $0x60] sm:$0xff] }
 0x13b   : > { %v846_v9 = vadd.s32 127, %v845_v2  ;;  %v843_v32 = vshrl.u32 %v825_v30, %v841_v20  ;;  %v3844_v39 = vshrl.u32 %v934_v36, 30  ;;  %v745_v51 = vand.u32 2147483647, %v744_v33 }
 0x13c   : > { %v643_v24 = vcvt.s32.f32 %v636_v60  ;;  %v747_v57 = vcvt.s32.f32 %v740_v41  ;;  %v929_v54 = vadd.s32 %v3809_v61, %v3814_v59  ;;  %vm3867_vm0 = vcmp.le.f32.partialorder %v561_v19, 0.7853982 }
 0x13d   : > { %v847_v58 = vshll.u32 %v846_v9, 23  ;;  %v936_v42 = vshll.u32 %v3844_v39, 30  ;;  %1258 = vperm.xlu0 %3053, %v1236_v38   ;;  %1268 = vperm.xlu1 %3054, %v1238_v48   ;;  %v844_v43 = vor.u32 %v843_v32, %v842_v4  ;;  %vm3873_vm1 = vcmp.le.f32.partialorder %v665_v22, 0.7853982  ;;  %v1248_v32 = vld [vmem:[%s3819_s16 + $0x68] sm:$0xff]  ;;  %v1249_v4 = vld [vmem:[%s3819_s16 + $0x70] sm:$0xff] }
 0x13e   : > { %v644_v46 = vmul.f32 %v643_v24, %v641_v1  ;;  %v748_v2 = vmul.f32 %v747_v57, %v745_v51  ;;  %vm3887_vm2 = vcmp.le.f32.partialorder %v769_v25, 0.7853982  ;;  %v855_v33 = vsub.s32 4, %v3782_v62  ;;  %v1428_v24 = vld [vmem:[%s4344_s5 + $0x8] sm:$0xff] }
 0x13f   : > { %v848_v40 = vor.u32 4788187, %v847_v58  ;;  %v937_v6 = vsub.s32 %v933_v56, %v936_v42  ;;  %v851_v63 = vcvt.s32.f32 %v844_v43  ;;  %v751_v25 = vsub.s32 4, %v3749_v49 }
 0x140   : > { %v645_v9 = vxor.u32 2147483648, %v644_v46  ;;  %v749_v12 = vxor.u32 2147483648, %v748_v2  ;;  %v647_v41 = vsub.s32 4, %v3722_v17  ;;  %v856_v43 = vsel %vm771_vm15, %v855_v33, %v3782_v62 }
 0x141   : > { %v849_v55 = vand.u32 2147483647, %v848_v40  ;;  %v939_v7 = vsub.s32 0, %v937_v6  ;;  %1273 = vperm.xlu0 %3053, %v1239_v44   ;;  %1278 = vperm.xlu1 %3054, %v1240_v45   ;;  %v1250_v40 = vld [vmem:[%s3819_s16 + $0x78] sm:$0xff]  ;;  %v959_v45 = vsub.s32 4, %v3844_v39  ;;  %v752_v51 = vsel %vm667_vm14, %v751_v25, %v3749_v49  ;;  %v1436_v25 = vld [vmem:[%s4344_s5 + $0x48] sm:$0xff] }
 0x142   : > { %v646_v20 = vsel %vm563_vm12, %v645_v9, %v644_v46  ;;  %v750_v29 = vsel %vm667_vm14, %v749_v12, %v748_v2  ;;  %v648_v62 = vsel %vm563_vm12, %v647_v41, %v3722_v17  ;;  %v858_v57 = vsel %vm3887_vm2, 0, %v856_v43  ;;  %v1430_v2 = vld [vmem:[%s4344_s5 + $0x18] sm:$0xff]  ;;  %s2730_s16 = sshll.u32 %s282_s15, 2 }
 0x143   : > { %v2766_v3 = vmin.u32 %v939_v7, %v937_v6  ;;  %v852_v5 = vmul.f32 %v851_v63, %v849_v55  ;;  %v649_v61 = vsel %vm3867_vm0, %v3620_v18, %v646_v20  ;;  %v753_v19 = vsel %vm3873_vm1, %v3624_v21, %v750_v29  ;;  %v1442_v7 = vld [vmem:[%s4344_s5 + $0x78] sm:$0xff]  ;;  %s284_s17 = scalar_lea.vmem [#allocation2], %s2730_s16 }
 0x144   : > { %3087 = vcosq.f32 %v649_v61  ;;  %vm875_vm3 = vcmp.lt.s32.totalorder %v3729_v26, 0  ;;  %v754_v49 = vsel %vm3873_vm1, 0, %v752_v51  ;;  %vm3924_vm4 = vcmp.le.f32.partialorder %v873_v37, 0.7853982  ;;  %v1429_v37 = vld [vmem:[%s4344_s5 + $0x10] sm:$0xff]  ;;  %s2637_s18 = sshll.u32 %s284_s17, 4  ;;  %s4294_s18 = int_to_ptr.vmem [resolvable:$true] %s2637_s18 }
 0x145   : > { %v941_v8 = vclz %v2766_v3  ;;  %1283 = vperm.xlu0 %3053, %v1241_v50   ;;  %1288 = vperm.xlu1 %3054, %v1242_v52   ;;  %v853_v15 = vxor.u32 2147483648, %v852_v5  ;;  %3089 = vcosq.f32 %v753_v19  ;;  %v960_v63 = vsel %vm875_vm3, %v959_v45, %v3844_v39  ;;  %v1437_v51 = vld [vmem:[%s4344_s5 + $0x50] sm:$0xff]  ;;  %s3359_s28 = scalar_lea.vmem %s4294_s18, 64  ;;  %p3366_p1 = scmp.lt.s32.totalorder %s4294_s18, %s3364_s8 }
 0x146   : > { %v650_v50 = vsel %vm3867_vm0, 0, %v648_v62  ;;  %v862_v39 = vadd.s32 3, %v858_v57  ;;  %v962_v9 = vsel %vm3924_vm4, 0, %v960_v63  ;;  %vm861_vm1 = vweird.f32 %v3637_v31  ;;  %v2809_v63 = vld [vmem:[%s4344_s5 + $0x80] sm:$0xff]  ;;  %p3360_p12 = scmp.ne.s32.totalorder %s4294_s18, %s3359_s28  ;;  %p3367_p2 = scmp.lt.s32.totalorder %s3365_s12, %s3359_s28 }
 0x147   : > { %v2767_v14 = vadd.s32 4294967294, %v941_v8  ;;  %v854_v35 = vsel %vm771_vm15, %v853_v15, %v852_v5  ;;  %v758_v8 = vadd.s32 3, %v754_v49  ;;  %v1432_v15 = vld [vmem:[%s4344_s5 + $0x28] sm:$0xff]  ;;  %v1441_v49 = vld [vmem:[%s4344_s5 + $0x70] sm:$0xff] }
 0x148   : > { %v857_v38 = vsel %vm3887_vm2, %v3637_v31, %v854_v35  ;;  %vm757_vm2 = vweird.f32 %v3624_v21  ;;  %v1439_v21 = vld [vmem:[%s4344_s5 + $0x60] sm:$0xff]  ;;  %p3361_p13 = pnand %p3360_p12, %p3523_p4  ;;  %p3368_p3 = por %p3367_p2, %p3366_p1 }
 0x149   : > { %vm2768_vm13 = vcmp.lt.s32.totalorder %v2767_v14, 0  ;;  %1293 = vperm.xlu0 %3053, %v1243_v10   ;;  %1298 = vperm.xlu1 %3054, %v1244_v11   ;;  %3091 = vcosq.f32 %v857_v38  ;;  %v654_v11 = vadd.s32 3, %v650_v50  ;;  %v979_v50 = vld [vmem:[%s4342_s3 + $0x10] sm:$0xff] }
 0x14a   : > { %v944_v53 = vsel %vm2768_vm13, 0, %v2767_v14  ;;  %3093 = vsinq.f32 %v857_v38  ;;  %v1431_v14 = vld [vmem:[%s4344_s5 + $0x20] sm:$0xff]  ;;  %p3362_p0 = pneg %p3361_p13 }
 0x14b   : > { %v945_v56 = vsub.s32 32, %v944_v53  ;;  %v949_v47 = vsub.s32 4294967266, %v944_v53  ;;  %v946_v59 = vshll.u32 %v937_v6, %v944_v53  ;;  %3095 = vsinq.f32 %v753_v19  ;;  %v1427_v6 = vld [vmem:[%s4344_s5] sm:$0xff] }
 0x14c   : > { %3097 = vsinq.f32 %v649_v61  ;;  %v966_v53 = vadd.s32 3, %v962_v9  ;;  %v1433_v61 = vld [vmem:[%s4344_s5 + $0x30] sm:$0xff]  ;;  %v2816_v9 = vld [vmem:[%s4344_s5 + $0xb8] sm:$0xff]  ;;  %p3369_p5 = pnand %p3368_p3, %p3362_p0 }
 0x14d   : > { %v947_v36 = vshrl.u32 %v929_v54, %v945_v56  ;;  %v950_v13 = vadd.s32 127, %v949_v47  ;;  %1303 = vperm.xlu0 %3053, %v1245_v23   ;;  %1308 = vperm.xlu1 %3054, %v1246_v27   ;;  %v863_v23 = vand.u32 3, %v862_v39  ;;  %v759_v27 = vand.u32 3, %v758_v8  ;;  %v2814_v39 = vld [vmem:[%s4344_s5 + $0xa8] sm:$0xff]  ;;  %v2815_v8 = vld [vmem:[%s4344_s5 + $0xb0] sm:$0xff] }
 0x14e   : > { %v3088_v17 = vpop.eup %3087  ;;  %v655_v56 = vand.u32 3, %v654_v11  ;;  %v2817_v11 = vld [vmem:[%s4344_s5 + $0xc0] sm:$0xff] }
 0x14f   : > { %v948_v48 = vor.u32 %v947_v36, %v946_v59  ;;  %v951_v28 = vshll.u32 %v950_v13, 23  ;;  %v3090_v3 = vpop.eup %3089  ;;  %v661_v35 = vxor.u32 2147483648, %v3088_v17  ;;  %v1434_v59 = vld [vmem:[%s4344_s5 + $0x38] sm:$0xff]  ;;  %v967_v36 = vand.u32 3, %v966_v53 }
 0x150   : > { %v765_v30 = vxor.u32 2147483648, %v3090_v3  ;;  %vm865_vm5 = vcmp.eq.s32.totalorder %v863_v23, 0  ;;  %vm868_vm6 = vcmp.eq.s32.totalorder %v863_v23, 2  ;;  %vm761_vm7 = vcmp.eq.s32.totalorder %v759_v27, 0  ;;  %v984_v53 = vld [vmem:[%s4342_s3 + $0x38] sm:$0xff] }
 0x151   : > { %v952_v60 = vor.u32 4788187, %v951_v28  ;;  %1313 = vperm.xlu0 %3053, %v1247_v16   ;;  %1318 = vperm.xlu1 %3054, %v1248_v32   ;;  %v955_v1 = vcvt.s32.f32 %v948_v48  ;;  %vm764_vm8 = vcmp.eq.s32.totalorder %v759_v27, 2  ;;  %vm657_vm9 = vcmp.eq.s32.totalorder %v655_v56, 0 }
 0x152   : > { %vm660_vm10 = vcmp.eq.s32.totalorder %v655_v56, 2  ;;  %vm864_vm11 = vcmp.lt.s32.totalorder %v863_v23, 2  ;;  %vm760_vm12 = vcmp.lt.s32.totalorder %v759_v27, 2  ;;  %vm972_vm13 = vcmp.eq.s32.totalorder %v967_v36, 2  ;;  %v2821_v23 = vld [vmem:[%s4344_s5 + $0xe0] sm:$0xff]  ;;  %v2822_v27 = vld [vmem:[%s4344_s5 + $0xe8] sm:$0xff] }
 0x153   : > { %v953_v42 = vand.u32 2147483647, %v952_v60  ;;  %v3092_v5 = vpop.eup %3091  ;;  %v1435_v60 = vld [vmem:[%s4344_s5 + $0x40] sm:$0xff]  ;;  %vm969_vm14 = vcmp.eq.s32.totalorder %v967_v36, 0  ;;  %vm656_vm15 = vcmp.lt.s32.totalorder %v655_v56, 2  ;;  %vm968_vm0 = vcmp.lt.s32.totalorder %v967_v36, 2 }
 0x154   : > { %v3094_v10 = vpop.eup %3093  ;;  %v869_v54 = vxor.u32 2147483648, %v3092_v5  ;;  %v2824_v56 = vld [vmem:[%s4344_s5 + $0xf8] sm:$0xff] }
 0x155   : > { %v956_v44 = vmul.f32 %v955_v1, %v953_v42  ;;  %1323 = vperm.xlu0 %3053, %v1249_v4   ;;  %1328 = vperm.xlu1 %3054, %v1250_v40   ;;  %v3096_v12 = vpop.eup %3095  ;;  %v866_v29 = vxor.u32 2147483648, %v3094_v10  ;;  %v988_v36 = vld [vmem:[%s4342_s3 + $0x58] sm:$0xff] }
 0x156   : > { %v3098_v20 = vpop.eup %3097  ;;  %v762_v47 = vxor.u32 2147483648, %v3096_v12  ;;  %v870_v19 = vsel %vm868_vm6, %v869_v54, %v3094_v10  ;;  %v766_v32 = vsel %vm764_vm8, %v765_v30, %v3096_v12  ;;  %v982_v10 = vld [vmem:[%s4342_s3 + $0x28] sm:$0xff]  ;;  %v2823_v54 = vld [vmem:[%s4344_s5 + $0xf0] sm:$0xff]  ;;  %v2849_v30 = vld [vmem:[%s4344_s5 + $0x100] sm:$0xff] }
 0x157   : > { %v957_v55 = vxor.u32 2147483648, %v956_v44  ;;  %v658_v58 = vxor.u32 2147483648, %v3098_v20  ;;  %v867_v13 = vsel %vm865_vm5, %v3092_v5, %v866_v29  ;;  %v662_v33 = vsel %vm660_vm10, %v661_v35, %v3098_v20  ;;  %v981_v5 = vld [vmem:[%s4342_s3 + $0x20] sm:$0xff]  ;;  %v2818_v12 = vld [vmem:[%s4344_s5 + $0xc8] sm:$0xff]  ;;  %v2820_v20 = vld [vmem:[%s4344_s5 + $0xd8] sm:$0xff] }
 0x158   : > { %v763_v16 = vsel %vm761_vm7, %v3090_v3, %v762_v47  ;;  %v871_v40 = vsel %vm864_vm11, %v867_v13, %v870_v19  ;;  %vm993_vm5 = vcmask 130048   ;;  %v2813_v3 = vld [vmem:[%s4344_s5 + $0xa0] sm:$0xff]  ;;  %v986_v47 = vld [vmem:[%s4342_s3 + $0x48] sm:$0xff]  ;;  %v987_v35 = vld [vmem:[%s4342_s3 + $0x50] sm:$0xff] }
 0x159   : > { %v958_v46 = vsel %vm875_vm3, %v957_v55, %v956_v44  ;;  %1445 = vperm.xlu0 %3053, %v1427_v6   ;;  %1450 = vperm.xlu1 %3054, %v1428_v24   ;;  %v659_v28 = vsel %vm657_vm9, %v3088_v17, %v658_v58  ;;  %v767_v41 = vsel %vm760_vm12, %v763_v16, %v766_v32  ;;  %vm965_vm3 = vweird.f32 %v3729_v26  ;;  %v1438_v6 = vld [vmem:[%s4344_s5 + $0x58] sm:$0xff]  ;;  %v2810_v17 = vld [vmem:[%s4344_s5 + $0x88] sm:$0xff]  ;;  %v985_v29 = vld [vmem:[%s4342_s3 + $0x40] sm:$0xff] }
 0x15a   : > { %v961_v52 = vsel %vm3924_vm4, %v3729_v26, %v958_v46  ;;  %v663_v43 = vsel %vm656_vm15, %v659_v28, %v662_v33  ;;  %v872_v45 = vsel %vm861_vm1, nan, %v871_v40  ;;  %vm653_vm4 = vweird.f32 %v3620_v18  ;;  %v1440_v26 = vld [vmem:[%s4344_s5 + $0x68] sm:$0xff]  ;;  %v977_v18 = vld [vmem:[%s4342_s3] sm:$0xff]  ;;  %v2855_v16 = vld [vmem:[%s4344_s5 + $0x130] sm:$0xff] }
 0x15b   : > { %3099 = vcosq.f32 %v961_v52  ;;  %v768_v24 = vsel %vm757_vm2, nan, %v767_v41  ;;  %v664_v55 = vsel %vm653_vm4, nan, %v663_v43  ;;  %v978_v46 = vld [vmem:[%s4342_s3 + $0x8] sm:$0xff]  ;;  %v2853_v13 = vld [vmem:[%s4344_s5 + $0x120] sm:$0xff]  ;;  %v2856_v32 = vld [vmem:[%s4344_s5 + $0x138] sm:$0xff] }
 0x15c   : > { %3101 = vsinq.f32 %v961_v52  ;;  %v2924_v57 = vpack.c.bf16 %v872_v45, %v664_v55  ;;  %v2811_v52 = vld [vmem:[%s4344_s5 + $0x90] sm:$0xff]  ;;  %v2850_v58 = vld [vmem:[%s4344_s5 + $0x108] sm:$0xff]  ;;  %v2861_v40 = vld [vmem:[%s4344_s5 + $0x160] sm:$0xff] }
 0x15d   : > { %1455 = vperm.xlu0 %3053, %v1429_v37   ;;  %1460 = vperm.xlu1 %3054, %v1430_v2   ;;  %v2812_v37 = vld [vmem:[%s4344_s5 + $0x98] sm:$0xff]  ;;  %v2854_v19 = vld [vmem:[%s4344_s5 + $0x128] sm:$0xff]  ;;  %v991_v33 = vld [vmem:[%s4342_s3 + $0x70] sm:$0xff] }
 0x15e   : > { %v980_v2 = vld [vmem:[%s4342_s3 + $0x18] sm:$0xff]  ;;  %v2858_v28 = vld [vmem:[%s4344_s5 + $0x148] sm:$0xff] }
 0x15f   : > { %v2862_v41 = vld [vmem:[%s4344_s5 + $0x168] sm:$0xff] }
 0x161   : > { %1465 = vperm.xlu0 %3053, %v1431_v14   ;;  %1470 = vperm.xlu1 %3054, %v1432_v15   ;;  %v983_v14 = vld [vmem:[%s4342_s3 + $0x30] sm:$0xff] }
 0x162   : > { %v2819_v15 = vld [vmem:[%s4344_s5 + $0xd0] sm:$0xff] }
 0x165   : > { %v3100_v22 = vpop.eup %3099  ;;  %1475 = vperm.xlu0 %3053, %v1433_v61   ;;  %1480 = vperm.xlu1 %3054, %v1434_v59   ;;  %v2851_v61 = vld [vmem:[%s4344_s5 + $0x110] sm:$0xff]  ;;  %v2852_v59 = vld [vmem:[%s4344_s5 + $0x118] sm:$0xff] }
 0x166   : > { %v3102_v38 = vpop.eup %3101  ;;  %v973_v48 = vxor.u32 2147483648, %v3100_v22 }
 0x167   : > { %v970_v4 = vxor.u32 2147483648, %v3102_v38 }
 0x168   : > { %v974_v42 = vsel %vm972_vm13, %v973_v48, %v3102_v38  ;;  %v990_v38 = vld [vmem:[%s4342_s3 + $0x68] sm:$0xff]  ;;  %v2857_v48 = vld [vmem:[%s4344_s5 + $0x140] sm:$0xff] }
 0x169   : > { %v971_v1 = vsel %vm969_vm14, %v3100_v22, %v970_v4  ;;  %1485 = vperm.xlu0 %3053, %v1435_v60   ;;  %1490 = vperm.xlu1 %3054, %v1436_v25   ;;  %v989_v22 = vld [vmem:[%s4342_s3 + $0x60] sm:$0xff]  ;;  %v2859_v60 = vld [vmem:[%s4344_s5 + $0x150] sm:$0xff]  ;;  %v2860_v25 = vld [vmem:[%s4344_s5 + $0x158] sm:$0xff] }
 0x16a   : > { %v975_v44 = vsel %vm968_vm0, %v971_v1, %v974_v42  ;;  %v992_v4 = vld [vmem:[%s4342_s3 + $0x78] sm:$0xff]  ;;  %v2889_v1 = vld [vmem:[%s4344_s5 + $0x180] sm:$0xff] }
 0x16b   : > { %v976_v31 = vsel %vm965_vm3, nan, %v975_v44  ;;  %v2864_v42 = vld [vmem:[%s4344_s5 + $0x178] sm:$0xff] }
 0x16c   : > { %v2922_v62 = vpack.c.bf16 %v976_v31, %v768_v24 }
 0x16d   : > { %1495 = vperm.xlu0 %3053, %v1437_v51   ;;  %1500 = vperm.xlu1 %3054, %v1438_v6  }
 0x16e   : > { %2923 = vmatprep.subr.bf16.mxu0 %v2922_v62 }
 0x16f   : > { %2925 = vmatpush1.bf16.msra.mxu0 %v2924_v57 }
 0x171   : > { %1505 = vperm.xlu0 %3053, %v1439_v21   ;;  %1510 = vperm.xlu1 %3054, %v1440_v26  }
 0x172   : > { %2769 = vmatmul.mubr.msk.f32.vlgmr.msra.gmra.mrb[4].mxu0 %vm993_vm5, %v977_v18 }
 0x173   : > { %1112 = vmatprep.mubr.f32.mxu0 %v3439_v0 }
 0x175   : > { %1515 = vperm.xlu0 %3053, %v1441_v49   ;;  %1520 = vperm.xlu1 %3054, %v1442_v7  }
 0x176   : > { %2770 = vmatmul.mubr.msk.f32.gmra.mrb[6].mxu0 %vm993_vm5, %v978_v46 }
 0x177   : > { %1118 = vmatprep.mubr.f32.mxu0 %v3439_v0 }
 0x179   : > { %1768 = vperm.xlu0 %3053, %v2809_v63   ;;  %1773 = vperm.xlu1 %3054, %v2810_v17  }
 0x17a   : > { %2771 = vmatmul.mubr.msk.f32.gmra.mrb[8].mxu0 %vm993_vm5, %v979_v50 }
 0x17b   : > { %1124 = vmatprep.mubr.f32.mxu0 %v3439_v0 }
 0x17d   : > { %1778 = vperm.xlu0 %3053, %v2811_v52   ;;  %1783 = vperm.xlu1 %3054, %v2812_v37  }
 0x17e   : > { %2772 = vmatmul.mubr.msk.f32.gmra.mrb[10].mxu0 %vm993_vm5, %v980_v2 }
 0x17f   : > { %1130 = vmatprep.mubr.f32.mxu0 %v3439_v0 }
 0x181   : > { %1788 = vperm.xlu0 %3053, %v2813_v3   ;;  %1793 = vperm.xlu1 %3054, %v2814_v39  }
 0x182   : > { %2773 = vmatmul.mubr.msk.f32.gmra.mrb[12].mxu0 %vm993_vm5, %v981_v5 }
 0x183   : > { %1136 = vmatprep.mubr.f32.mxu0 %v3439_v0 }
 0x185   : > { %1798 = vperm.xlu0 %3053, %v2815_v8   ;;  %1803 = vperm.xlu1 %3054, %v2816_v9  }
 0x186   : > { %2774 = vmatmul.mubr.msk.f32.gmra.mrb[14].mxu0 %vm993_vm5, %v982_v10 }
 0x187   : > { %1142 = vmatprep.mubr.f32.mxu0 %v3439_v0 }
 0x189   : > { %1808 = vperm.xlu0 %3053, %v2817_v11   ;;  %1813 = vperm.xlu1 %3054, %v2818_v12  }
 0x18a   : > { %2775 = vmatmul.mubr.msk.f32.gmra.mrb[16].mxu0 %vm993_vm5, %v983_v14 }
 0x18b   : > { %1148 = vmatprep.mubr.f32.mxu0 %v3439_v0 }
 0x18d   : > { %1818 = vperm.xlu0 %3053, %v2819_v15   ;;  %1823 = vperm.xlu1 %3054, %v2820_v20  }
 0x18e   : > { %2776 = vmatmul.mubr.msk.f32.gmra.mrb[18].mxu0 %vm993_vm5, %v984_v53 }
 0x18f   : > { %1154 = vmatprep.mubr.f32.mxu0 %v3439_v0 }
 0x191   : > { %1828 = vperm.xlu0 %3053, %v2821_v23   ;;  %1833 = vperm.xlu1 %3054, %v2822_v27  }
 0x192   : > { %2777 = vmatmul.mubr.msk.f32.gmra.mrb[20].mxu0 %vm993_vm5, %v985_v29 }
 0x193   : > { %1160 = vmatprep.mubr.f32.mxu0 %v3439_v0 }
 0x195   : > { %1838 = vperm.xlu0 %3053, %v2823_v54   ;;  %1843 = vperm.xlu1 %3054, %v2824_v56  }
 0x196   : > { %2778 = vmatmul.mubr.msk.f32.gmra.mrb[22].mxu0 %vm993_vm5, %v986_v47 }
 0x197   : > { %1166 = vmatprep.mubr.f32.mxu0 %v3439_v0 }
 0x199   : > { %2091 = vperm.xlu0 %3053, %v2849_v30   ;;  %2096 = vperm.xlu1 %3054, %v2850_v58  }
 0x19a   : > { %2779 = vmatmul.mubr.msk.f32.gmra.mrb[24].mxu0 %vm993_vm5, %v987_v35 }
 0x19b   : > { %1172 = vmatprep.mubr.f32.mxu0 %v3439_v0 }
 0x19d   : > { %2101 = vperm.xlu0 %3053, %v2851_v61   ;;  %2106 = vperm.xlu1 %3054, %v2852_v59  }
 0x19e   : > { %2780 = vmatmul.mubr.msk.f32.gmra.mrb[26].mxu0 %vm993_vm5, %v988_v36 }
 0x19f   : > { %1178 = vmatprep.mubr.f32.mxu0 %v3439_v0 }
 0x1a1   : > { %2111 = vperm.xlu0 %3053, %v2853_v13   ;;  %2116 = vperm.xlu1 %3054, %v2854_v19  }
 0x1a2   : > { %2781 = vmatmul.mubr.msk.f32.gmra.mrb[28].mxu0 %vm993_vm5, %v989_v22 }
 0x1a3   : > { %1184 = vmatprep.mubr.f32.mxu0 %v3439_v0 }
 0x1a5   : > { %2121 = vperm.xlu0 %3053, %v2855_v16   ;;  %2126 = vperm.xlu1 %3054, %v2856_v32  }
 0x1a6   : > { %2782 = vmatmul.mubr.msk.f32.gmra.mrb[30].mxu0 %vm993_vm5, %v990_v38 }
 0x1a7   : > { %1190 = vmatprep.mubr.f32.mxu0 %v3439_v0 }
 0x1a9   : > { %2131 = vperm.xlu0 %3053, %v2857_v48   ;;  %2136 = vperm.xlu1 %3054, %v2858_v28  }
 0x1aa   : > { %2783 = vmatmul.mubr.msk.f32.gmra.mrb[32].mxu0 %vm993_vm5, %v991_v33 }
 0x1ab   : > { %1196 = vmatprep.mubr.f32.mxu0 %v3439_v0  ;;  %v2863_v0 = vld [vmem:[%s4344_s5 + $0x170] sm:$0xff] }
 0x1ad   : > { %2141 = vperm.xlu0 %3053, %v2859_v60   ;;  %2146 = vperm.xlu1 %3054, %v2860_v25  }
 0x1ae   : > { %2784 = vmatmul.mubr.msk.f32.gmra.mrb[34].mxu0 %vm993_vm5, %v992_v4 }
 0x1af   : > { %2249 = vmatprep.mubr.bf16.mxu0 %v3446_v34 }
 0x1b1   : > { %2151 = vperm.xlu0 %3053, %v2861_v40   ;;  %2156 = vperm.xlu1 %3054, %v2862_v41  }
 0x1b5   : > { %2161 = vperm.xlu0 %3053, %v2863_v0   ;;  %2166 = vperm.xlu1 %3054, %v2864_v42  }
 0x1b8   : > { %v1254_v43 = vpop.permute.xlu0 %1253  ;;  %v1264_v57 = vpop.permute.xlu1 %1263 }
 0x1b9   : > { %2414 = vperm.xlu0 %3053, %v2889_v1  }
 0x1bc   : > { %v1259_v24 = vpop.permute.xlu0 %1258  ;;  %v1269_v46 = vpop.permute.xlu1 %1268 }
 0x1c0   : > { %v1274_v3 = vpop.permute.xlu0 %1273  ;;  %v1279_v15 = vpop.permute.xlu1 %1278 }
 0x1c4   : > { %v1284_v56 = vpop.permute.xlu0 %1283  ;;  %v1289_v19 = vpop.permute.xlu1 %1288 }
 0x1c8   : > { %v1294_v33 = vpop.permute.xlu0 %1293 }
 0x245   : > { %v1108_v44 = vpop.f32.mrb[4].mxu0 }
 0x246   : > { %v1331_v45 = vadd.f32 %v1254_v43, %v1108_v44  ;;  %v1110_v51 = vpop.f32.mrb[5].mxu0 }
 0x247   : > { %v1332_v6 = vadd.f32 %v1254_v43, %v1110_v51  ;;  %v1299_v43 = vpop.permute.xlu1 %1298 }
 0x248   : > { %3103 = vtanh.f32 %v1331_v45 }
 0x249   : > { %v1114_v31 = vpop.f32.mrb[6].mxu0  ;;  %3105 = vtanh.f32 %v1332_v6 }
 0x24a   : > { %v1333_v62 = vadd.f32 %v1259_v24, %v1114_v31  ;;  %v1116_v55 = vpop.f32.mrb[7].mxu0 }
 0x24b   : > { %v1334_v21 = vadd.f32 %v1259_v24, %v1116_v55 }
 0x24c   : > { %3107 = vtanh.f32 %v1333_v62  ;;  %v1304_v62 = vpop.permute.xlu0 %1303 }
 0x24d   : > { %3109 = vtanh.f32 %v1334_v21  ;;  %v1120_v26 = vpop.f32.mrb[8].mxu0 }
 0x24e   : > { %v1335_v18 = vadd.f32 %v1264_v57, %v1120_v26  ;;  %v1122_v49 = vpop.f32.mrb[9].mxu0 }
 0x24f   : > { %v1336_v7 = vadd.f32 %v1264_v57, %v1122_v49 }
 0x250   : > { %3111 = vtanh.f32 %v1335_v18 }
 0x251   : > { %v1126_v63 = vpop.f32.mrb[10].mxu0  ;;  %3113 = vtanh.f32 %v1336_v7 }
 0x252   : > { %v1337_v17 = vadd.f32 %v1269_v46, %v1126_v63  ;;  %v1128_v50 = vpop.f32.mrb[11].mxu0  ;;  %v3104_v37 = vpop.eup %3103 }
 0x253   : > { %v1338_v52 = vadd.f32 %v1269_v46, %v1128_v50  ;;  %v3106_v2 = vpop.eup %3105  ;;  %v1309_v63 = vpop.permute.xlu1 %1308 }
 0x254   : > { %3115 = vtanh.f32 %v1337_v17 }
 0x255   : > { %3117 = vtanh.f32 %v1338_v52  ;;  %v1132_v39 = vpop.f32.mrb[12].mxu0 }
 0x256   : > { %v3108_v5 = vpop.eup %3107  ;;  %v1339_v8 = vadd.f32 %v1274_v3, %v1132_v39  ;;  %v1134_v9 = vpop.f32.mrb[13].mxu0 }
 0x257   : > { %v3110_v10 = vpop.eup %3109  ;;  %v1340_v11 = vadd.f32 %v1274_v3, %v1134_v9  ;;  %v1395_v12 = vpack.c.bf16 %v3108_v5, %v3104_v37  ;;  %v1314_v39 = vpop.permute.xlu0 %1313 }
 0x258   : > { %v1396_v14 = vpack.c.bf16 %v3110_v10, %v3106_v2  ;;  %3119 = vtanh.f32 %v1339_v8 }
 0x259   : > { %v1138_v20 = vpop.f32.mrb[14].mxu0  ;;  %3121 = vtanh.f32 %v1340_v11 }
 0x25a   : > { %v1341_v53 = vadd.f32 %v1279_v15, %v1138_v20  ;;  %v1140_v23 = vpop.f32.mrb[15].mxu0  ;;  %1571 = vmatprep.subr.bf16.mxu1 %v1396_v14  ;;  %v3112_v29 = vpop.eup %3111 }
 0x25b   : > { %v1342_v27 = vadd.f32 %v1279_v15, %v1140_v23  ;;  %1572 = vmatpush1.bf16.msra.mxu1 %v1395_v12  ;;  %v3114_v54 = vpop.eup %3113  ;;  %v1319_v20 = vpop.permute.xlu1 %1318 }
 0x25c   : > { %3123 = vtanh.f32 %v1341_v53 }
 0x25d   : > { %3125 = vtanh.f32 %v1342_v27  ;;  %v1144_v47 = vpop.f32.mrb[16].mxu0 }
 0x25e   : > { %v3116_v30 = vpop.eup %3115  ;;  %v1343_v58 = vadd.f32 %v1284_v56, %v1144_v47  ;;  %v1146_v35 = vpop.f32.mrb[17].mxu0 }
 0x25f   : > { %v3118_v61 = vpop.eup %3117  ;;  %v1344_v59 = vadd.f32 %v1284_v56, %v1146_v35  ;;  %v1397_v36 = vpack.c.bf16 %v3116_v30, %v3112_v29  ;;  %v1324_v47 = vpop.permute.xlu0 %1323 }
 0x260   : > { %v1398_v13 = vpack.c.bf16 %v3118_v61, %v3114_v54  ;;  %3127 = vtanh.f32 %v1343_v58 }
 0x261   : > { %v1150_v22 = vpop.f32.mrb[18].mxu0  ;;  %3129 = vtanh.f32 %v1344_v59 }
 0x262   : > { %v1345_v16 = vadd.f32 %v1289_v19, %v1150_v22  ;;  %v1152_v32 = vpop.f32.mrb[19].mxu0  ;;  %1573 = vmatprep.subr.bf16.mxu1 %v1398_v13  ;;  %v3120_v48 = vpop.eup %3119 }
 0x263   : > { %v1346_v38 = vadd.f32 %v1289_v19, %v1152_v32  ;;  %1574 = vmatpush1.bf16.msra.mxu1 %v1397_v36  ;;  %v3122_v28 = vpop.eup %3121  ;;  %v1329_v22 = vpop.permute.xlu1 %1328 }
 0x264   : > { %3131 = vtanh.f32 %v1345_v16 }
 0x265   : > { %3133 = vtanh.f32 %v1346_v38  ;;  %v1156_v60 = vpop.f32.mrb[20].mxu0 }
 0x266   : > { %v3124_v25 = vpop.eup %3123  ;;  %v1347_v4 = vadd.f32 %v1294_v33, %v1156_v60  ;;  %v1158_v40 = vpop.f32.mrb[21].mxu0 }
 0x267   : > { %v3126_v41 = vpop.eup %3125  ;;  %v1348_v0 = vadd.f32 %v1294_v33, %v1158_v40  ;;  %v1399_v42 = vpack.c.bf16 %v3124_v25, %v3120_v48 }
 0x268   : > { %v1400_v1 = vpack.c.bf16 %v3126_v41, %v3122_v28  ;;  %3135 = vtanh.f32 %v1347_v4 }
 0x269   : > { %v1162_v44 = vpop.f32.mrb[22].mxu0  ;;  %3137 = vtanh.f32 %v1348_v0 }
 0x26a   : > { %v1349_v45 = vadd.f32 %v1299_v43, %v1162_v44  ;;  %v1164_v51 = vpop.f32.mrb[23].mxu0  ;;  %1575 = vmatprep.subr.bf16.mxu1 %v1400_v1  ;;  %v3128_v24 = vpop.eup %3127 }
 0x26b   : > { %v1350_v6 = vadd.f32 %v1299_v43, %v1164_v51  ;;  %1576 = vmatpush1.bf16.msra.mxu1 %v1399_v42  ;;  %v3130_v31 = vpop.eup %3129  ;;  %v3056_v51 = vld [vmem:[%s4343_s4 + $0x8] sm:$0xff]  }
 0x26c   : > { %3139 = vtanh.f32 %v1349_v45  ;;  %v3055_v45 = vld [vmem:[%s4343_s4] sm:$0xff]  }
 0x26d   : > { %3141 = vtanh.f32 %v1350_v6  ;;  %v1168_v55 = vpop.f32.mrb[24].mxu0  ;;  %v3057_v6 = vld [vmem:[%s4343_s4 + $0x10] sm:$0xff]  }
 0x26e   : > { %v3132_v57 = vpop.eup %3131  ;;  %v1351_v21 = vadd.f32 %v1304_v62, %v1168_v55  ;;  %v1170_v26 = vpop.f32.mrb[25].mxu0  ;;  %v3061_v55 = vld [vmem:[%s4343_s4 + $0x30] sm:$0xff]  }
 0x26f   : > { %v3134_v18 = vpop.eup %3133  ;;  %v1352_v49 = vadd.f32 %v1304_v62, %v1170_v26  ;;  %v1401_v7 = vpack.c.bf16 %v3132_v57, %v3128_v24  ;;  %v3058_v24 = vld [vmem:[%s4343_s4 + $0x18] sm:$0xff]   ;;  %v3060_v62 = vld [vmem:[%s4343_s4 + $0x28] sm:$0xff]  }
 0x270   : > { %v1402_v46 = vpack.c.bf16 %v3134_v18, %v3130_v31  ;;  %3143 = vtanh.f32 %v1351_v21  ;;  %v3059_v31 = vld [vmem:[%s4343_s4 + $0x20] sm:$0xff]   ;;  %v3062_v57 = vld [vmem:[%s4343_s4 + $0x38] sm:$0xff]   ;;  %v1446_v21 = vpop.permute.xlu0 %1445 }
 0x271   : > { %v1174_v17 = vpop.f32.mrb[26].mxu0  ;;  %3145 = vtanh.f32 %v1352_v49 }
 0x272   : > { %v1353_v50 = vadd.f32 %v1309_v63, %v1174_v17  ;;  %v1176_v52 = vpop.f32.mrb[27].mxu0  ;;  %1577 = vmatprep.subr.bf16.mxu1 %v1402_v46  ;;  %v3136_v2 = vpop.eup %3135 }
 0x273   : > { %v1354_v37 = vadd.f32 %v1309_v63, %v1176_v52  ;;  %1578 = vmatpush1.bf16.msra.mxu1 %v1401_v7  ;;  %v3138_v3 = vpop.eup %3137  ;;  %v1451_v7 = vpop.permute.xlu1 %1450 }
 0x274   : > { %3147 = vtanh.f32 %v1353_v50 }
 0x275   : > { %3149 = vtanh.f32 %v1354_v37  ;;  %v1180_v5 = vpop.f32.mrb[28].mxu0  ;;  %v1456_v37 = vpop.permute.xlu0 %1455 }
 0x276   : > { %v3140_v8 = vpop.eup %3139  ;;  %v1355_v9 = vadd.f32 %v1314_v39, %v1180_v5  ;;  %v1182_v10 = vpop.f32.mrb[29].mxu0 }
 0x277   : > { %v3142_v11 = vpop.eup %3141  ;;  %v1356_v12 = vadd.f32 %v1314_v39, %v1182_v10  ;;  %v1403_v14 = vpack.c.bf16 %v3140_v8, %v3136_v2  ;;  %v1461_v5 = vpop.permute.xlu1 %1460 }
 0x278   : > { %v1404_v15 = vpack.c.bf16 %v3142_v11, %v3138_v3  ;;  %3151 = vtanh.f32 %v1355_v9 }
 0x279   : > { %v1186_v53 = vpop.f32.mrb[30].mxu0  ;;  %3153 = vtanh.f32 %v1356_v12 }
 0x27a   : > { %v1357_v23 = vadd.f32 %v1319_v20, %v1186_v53  ;;  %v1188_v27 = vpop.f32.mrb[31].mxu0  ;;  %1579 = vmatprep.subr.bf16.mxu1 %v1404_v15  ;;  %v3144_v54 = vpop.eup %3143 }
 0x27b   : > { %v1358_v29 = vadd.f32 %v1319_v20, %v1188_v27  ;;  %1580 = vmatpush1.bf16.msra.mxu1 %v1403_v14  ;;  %v3146_v56 = vpop.eup %3145 }
 0x27c   : > { %3155 = vtanh.f32 %v1357_v23  ;;  %v1466_v23 = vpop.permute.xlu0 %1465 }
 0x27d   : > { %3157 = vtanh.f32 %v1358_v29  ;;  %v1192_v30 = vpop.f32.mrb[32].mxu0 }
 0x27e   : > { %v3148_v58 = vpop.eup %3147  ;;  %v1359_v35 = vadd.f32 %v1324_v47, %v1192_v30  ;;  %v1194_v61 = vpop.f32.mrb[33].mxu0 }
 0x27f   : > { %v3150_v59 = vpop.eup %3149  ;;  %v1360_v36 = vadd.f32 %v1324_v47, %v1194_v61  ;;  %v1405_v13 = vpack.c.bf16 %v3148_v58, %v3144_v54  ;;  %v1471_v30 = vpop.permute.xlu1 %1470 }
 0x280   : > { %v1406_v19 = vpack.c.bf16 %v3150_v59, %v3146_v56  ;;  %3159 = vtanh.f32 %v1359_v35 }
 0x281   : > { %v1198_v16 = vpop.f32.mrb[34].mxu0  ;;  %3161 = vtanh.f32 %v1360_v36 }
 0x282   : > { %v1361_v32 = vadd.f32 %v1329_v22, %v1198_v16  ;;  %v1200_v38 = vpop.f32.mrb[35].mxu0  ;;  %1581 = vmatprep.subr.bf16.mxu1 %v1406_v19  ;;  %v3152_v28 = vpop.eup %3151 }
 0x283   : > { %v1362_v48 = vadd.f32 %v1329_v22, %v1200_v38  ;;  %1582 = vmatpush1.bf16.msra.mxu1 %v1405_v13  ;;  %v3154_v33 = vpop.eup %3153 }
 0x284   : > { %3163 = vtanh.f32 %v1361_v32  ;;  %v1476_v32 = vpop.permute.xlu0 %1475 }
 0x285   : > { %3165 = vtanh.f32 %v1362_v48 }
 0x286   : > { %v3156_v60 = vpop.eup %3155 }
 0x287   : > { %v3158_v25 = vpop.eup %3157  ;;  %v1407_v4 = vpack.c.bf16 %v3156_v60, %v3152_v28 }
 0x288   : > { %v1408_v40 = vpack.c.bf16 %v3158_v25, %v3154_v33  ;;  %v1481_v25 = vpop.permute.xlu1 %1480 }
 0x28a   : > { %1583 = vmatprep.subr.bf16.mxu1 %v1408_v40  ;;  %v3160_v41 = vpop.eup %3159 }
 0x28b   : > { %1584 = vmatpush1.bf16.msra.mxu1 %v1407_v4  ;;  %v3162_v0 = vpop.eup %3161 }
 0x28e   : > { %v3164_v42 = vpop.eup %3163 }
 0x28f   : > { %v3166_v1 = vpop.eup %3165  ;;  %v1409_v43 = vpack.c.bf16 %v3164_v42, %v3160_v41 }
 0x290   : > { %v1410_v44 = vpack.c.bf16 %v3166_v1, %v3162_v0 }
 0x292   : > { %1585 = vmatprep.subr.bf16.mxu1 %v1410_v44 }
 0x293   : > { %1586 = vmatpush1.bf16.msra.mxu1 %v1409_v43 }
 0x296   : > { %1604 = vmatmul.mubr.bf16.vlgmr.msra.gmra.mrb[0].mxu1 %v3055_v45 }
 0x297   : > { %1613 = vmatprep.mubr.bf16.mxu1 %v3446_v34 }
 0x29e   : > { %1614 = vmatmul.mubr.bf16.gmra.mrb[4].mxu1 %v3056_v51  ;;  %v1486_v51 = vpop.permute.xlu0 %1485 }
 0x29f   : > { %1623 = vmatprep.mubr.bf16.mxu1 %v3446_v34 }
 0x2a6   : > { %1624 = vmatmul.mubr.bf16.gmra.mrb[8].mxu1 %v3057_v6 }
 0x2a7   : > { %1633 = vmatprep.mubr.bf16.mxu1 %v3446_v34 }
 0x2ae   : > { %1634 = vmatmul.mubr.bf16.gmra.mrb[12].mxu1 %v3058_v24 }
 0x2af   : > { %1643 = vmatprep.mubr.bf16.mxu1 %v3446_v34 }
 0x2b6   : > { %1644 = vmatmul.mubr.bf16.gmra.mrb[16].mxu1 %v3059_v31 }
 0x2b7   : > { %1653 = vmatprep.mubr.bf16.mxu1 %v3446_v34 }
 0x2be   : > { %1654 = vmatmul.mubr.bf16.gmra.mrb[20].mxu1 %v3060_v62 }
 0x2bf   : > { %1663 = vmatprep.mubr.bf16.mxu1 %v3446_v34 }
 0x2c6   : > { %1664 = vmatmul.mubr.bf16.gmra.mrb[24].mxu1 %v3061_v55 }
 0x2c7   : > { %1673 = vmatprep.mubr.bf16.mxu1 %v3446_v34 }
 0x2ce   : > { %1674 = vmatmul.mubr.bf16.gmra.mrb[28].mxu1 %v3062_v57  ;;  %v1491_v57 = vpop.permute.xlu1 %1490 }
 0x2cf   : > { %1926 = vmatprep.mubr.bf16.mxu1 %v3446_v34 }
 0x369   : > { %v1605_v26 = vpop.f32.mrb[0].mxu1 }
 0x36a   : > { %v1606_v18 = vadd.f32 %v1605_v26, %v1446_v21  ;;  %v1607_v49 = vpop.f32.mrb[1].mxu1 }
 0x36b   : > { %v1608_v46 = vadd.f32 %v1607_v49, %v1446_v21  ;;  %v1609_v63 = vpop.f32.mrb[2].mxu1 }
 0x36c   : > { %3167 = vtanh.f32 %v1606_v18  ;;  %v1610_v17 = vadd.f32 %v1609_v63, %v1451_v7  ;;  %v1611_v50 = vpop.f32.mrb[3].mxu1 }
 0x36d   : > { %3169 = vtanh.f32 %v1608_v46  ;;  %v1612_v52 = vadd.f32 %v1611_v50, %v1451_v7 }
 0x36e   : > { %3171 = vtanh.f32 %v1610_v17 }
 0x36f   : > { %3173 = vtanh.f32 %v1612_v52  ;;  %v1496_v52 = vpop.permute.xlu0 %1495 }
 0x371   : > { %v1615_v2 = vpop.f32.mrb[4].mxu1 }
 0x372   : > { %v1616_v3 = vadd.f32 %v1615_v2, %v1456_v37  ;;  %v1617_v39 = vpop.f32.mrb[5].mxu1 }
 0x373   : > { %v1618_v8 = vadd.f32 %v1617_v39, %v1456_v37  ;;  %v1619_v9 = vpop.f32.mrb[6].mxu1 }
 0x374   : > { %3175 = vtanh.f32 %v1616_v3  ;;  %v1620_v10 = vadd.f32 %v1619_v9, %v1461_v5  ;;  %v1621_v11 = vpop.f32.mrb[7].mxu1 }
 0x375   : > { %3177 = vtanh.f32 %v1618_v8  ;;  %v1622_v12 = vadd.f32 %v1621_v11, %v1461_v5  ;;  %v1501_v8 = vpop.permute.xlu1 %1500 }
 0x376   : > { %v3168_v14 = vpop.eup %3167  ;;  %3179 = vtanh.f32 %v1620_v10 }
 0x377   : > { %v3170_v15 = vpop.eup %3169  ;;  %3181 = vtanh.f32 %v1622_v12 }
 0x378   : > { %v3172_v20 = vpop.eup %3171 }
 0x379   : > { %v3174_v53 = vpop.eup %3173  ;;  %v1625_v27 = vpop.f32.mrb[8].mxu1  ;;  %v1716_v29 = vpack.c.bf16 %v3172_v20, %v3168_v14 }
 0x37a   : > { %v1626_v54 = vadd.f32 %v1625_v27, %v1466_v23  ;;  %v1627_v56 = vpop.f32.mrb[9].mxu1  ;;  %v1717_v47 = vpack.c.bf16 %v3174_v53, %v3170_v15  ;;  %v1506_v27 = vpop.permute.xlu0 %1505 }
 0x37b   : > { %v1628_v58 = vadd.f32 %v1627_v56, %v1466_v23  ;;  %v1629_v35 = vpop.f32.mrb[10].mxu1 }
 0x37c   : > { %3183 = vtanh.f32 %v1626_v54  ;;  %v1630_v61 = vadd.f32 %v1629_v35, %v1471_v30  ;;  %v1631_v59 = vpop.f32.mrb[11].mxu1  ;;  %1894 = vmatprep.subr.bf16.mxu1 %v1717_v47 }
 0x37d   : > { %3185 = vtanh.f32 %v1628_v58  ;;  %v1632_v36 = vadd.f32 %v1631_v59, %v1471_v30  ;;  %1895 = vmatpush1.bf16.msra.mxu1 %v1716_v29  ;;  %v1511_v58 = vpop.permute.xlu1 %1510 }
 0x37e   : > { %v3176_v13 = vpop.eup %3175  ;;  %3187 = vtanh.f32 %v1630_v61 }
 0x37f   : > { %v3178_v19 = vpop.eup %3177  ;;  %3189 = vtanh.f32 %v1632_v36 }
 0x380   : > { %v3180_v22 = vpop.eup %3179 }
 0x381   : > { %v3182_v16 = vpop.eup %3181  ;;  %v1635_v38 = vpop.f32.mrb[12].mxu1  ;;  %v1718_v48 = vpack.c.bf16 %v3180_v22, %v3176_v13 }
 0x382   : > { %v1636_v28 = vadd.f32 %v1635_v38, %v1476_v32  ;;  %v1637_v33 = vpop.f32.mrb[13].mxu1  ;;  %v1719_v60 = vpack.c.bf16 %v3182_v16, %v3178_v19  ;;  %v1516_v38 = vpop.permute.xlu0 %1515 }
 0x383   : > { %v1638_v4 = vadd.f32 %v1637_v33, %v1476_v32  ;;  %v1639_v40 = vpop.f32.mrb[14].mxu1 }
 0x384   : > { %3191 = vtanh.f32 %v1636_v28  ;;  %v1640_v41 = vadd.f32 %v1639_v40, %v1481_v25  ;;  %v1641_v0 = vpop.f32.mrb[15].mxu1  ;;  %1896 = vmatprep.subr.bf16.mxu1 %v1719_v60 }
 0x385   : > { %3193 = vtanh.f32 %v1638_v4  ;;  %v1642_v42 = vadd.f32 %v1641_v0, %v1481_v25  ;;  %1897 = vmatpush1.bf16.msra.mxu1 %v1718_v48  ;;  %v1521_v4 = vpop.permute.xlu1 %1520 }
 0x386   : > { %v3184_v1 = vpop.eup %3183  ;;  %3195 = vtanh.f32 %v1640_v41 }
 0x387   : > { %v3186_v43 = vpop.eup %3185  ;;  %3197 = vtanh.f32 %v1642_v42 }
 0x388   : > { %v3188_v44 = vpop.eup %3187 }
 0x389   : > { %v3190_v45 = vpop.eup %3189  ;;  %v1645_v6 = vpop.f32.mrb[16].mxu1  ;;  %v1720_v24 = vpack.c.bf16 %v3188_v44, %v3184_v1 }
 0x38a   : > { %v1646_v31 = vadd.f32 %v1645_v6, %v1486_v51  ;;  %v1647_v62 = vpop.f32.mrb[17].mxu1  ;;  %v1721_v55 = vpack.c.bf16 %v3190_v45, %v3186_v43 }
 0x38b   : > { %v1648_v21 = vadd.f32 %v1647_v62, %v1486_v51  ;;  %v1649_v26 = vpop.f32.mrb[18].mxu1 }
 0x38c   : > { %3199 = vtanh.f32 %v1646_v31  ;;  %v1650_v18 = vadd.f32 %v1649_v26, %v1491_v57  ;;  %v1651_v49 = vpop.f32.mrb[19].mxu1  ;;  %1898 = vmatprep.subr.bf16.mxu1 %v1721_v55 }
 0x38d   : > { %3201 = vtanh.f32 %v1648_v21  ;;  %v1652_v7 = vadd.f32 %v1651_v49, %v1491_v57  ;;  %1899 = vmatpush1.bf16.msra.mxu1 %v1720_v24  ;;  %v3064_v49 = vld [vmem:[%s4343_s4 + $0x48] sm:$0xff]  }
 0x38e   : > { %v3192_v46 = vpop.eup %3191  ;;  %3203 = vtanh.f32 %v1650_v18  ;;  %v3063_v18 = vld [vmem:[%s4343_s4 + $0x40] sm:$0xff]  }
 0x38f   : > { %v3194_v63 = vpop.eup %3193  ;;  %3205 = vtanh.f32 %v1652_v7  ;;  %v3065_v7 = vld [vmem:[%s4343_s4 + $0x50] sm:$0xff]  }
 0x390   : > { %v3196_v17 = vpop.eup %3195 }
 0x391   : > { %v3198_v50 = vpop.eup %3197  ;;  %v1655_v37 = vpop.f32.mrb[20].mxu1  ;;  %v1722_v2 = vpack.c.bf16 %v3196_v17, %v3192_v46  ;;  %v3066_v46 = vld [vmem:[%s4343_s4 + $0x58] sm:$0xff]   ;;  %v3068_v17 = vld [vmem:[%s4343_s4 + $0x68] sm:$0xff]  }
 0x392   : > { %v1656_v3 = vadd.f32 %v1655_v37, %v1496_v52  ;;  %v1657_v39 = vpop.f32.mrb[21].mxu1  ;;  %v1723_v5 = vpack.c.bf16 %v3198_v50, %v3194_v63  ;;  %v3067_v63 = vld [vmem:[%s4343_s4 + $0x60] sm:$0xff]   ;;  %v3069_v50 = vld [vmem:[%s4343_s4 + $0x70] sm:$0xff]   ;;  %v1769_v37 = vpop.permute.xlu0 %1768 }
 0x393   : > { %v1658_v9 = vadd.f32 %v1657_v39, %v1496_v52  ;;  %v1659_v10 = vpop.f32.mrb[22].mxu1  ;;  %v3070_v52 = vld [vmem:[%s4343_s4 + $0x78] sm:$0xff]  }
 0x394   : > { %3207 = vtanh.f32 %v1656_v3  ;;  %v1660_v11 = vadd.f32 %v1659_v10, %v1501_v8  ;;  %v1661_v12 = vpop.f32.mrb[23].mxu1  ;;  %1900 = vmatprep.subr.bf16.mxu1 %v1723_v5  ;;  %v1774_v5 = vpop.permute.xlu1 %1773 }
 0x395   : > { %3209 = vtanh.f32 %v1658_v9  ;;  %v1662_v14 = vadd.f32 %v1661_v12, %v1501_v8  ;;  %1901 = vmatpush1.bf16.msra.mxu1 %v1722_v2 }
 0x396   : > { %v3200_v15 = vpop.eup %3199  ;;  %3211 = vtanh.f32 %v1660_v11 }
 0x397   : > { %v3202_v20 = vpop.eup %3201  ;;  %3213 = vtanh.f32 %v1662_v14  ;;  %v1779_v14 = vpop.permute.xlu0 %1778 }
 0x398   : > { %v3204_v53 = vpop.eup %3203 }
 0x399   : > { %v3206_v23 = vpop.eup %3205  ;;  %v1665_v29 = vpop.f32.mrb[24].mxu1  ;;  %v1724_v54 = vpack.c.bf16 %v3204_v53, %v3200_v15 }
 0x39a   : > { %v1666_v56 = vadd.f32 %v1665_v29, %v1506_v27  ;;  %v1667_v47 = vpop.f32.mrb[25].mxu1  ;;  %v1725_v30 = vpack.c.bf16 %v3206_v23, %v3202_v20  ;;  %v1784_v23 = vpop.permute.xlu1 %1783 }
 0x39b   : > { %v1668_v35 = vadd.f32 %v1667_v47, %v1506_v27  ;;  %v1669_v61 = vpop.f32.mrb[26].mxu1 }
 0x39c   : > { %3215 = vtanh.f32 %v1666_v56  ;;  %v1670_v59 = vadd.f32 %v1669_v61, %v1511_v58  ;;  %v1671_v36 = vpop.f32.mrb[27].mxu1  ;;  %1902 = vmatprep.subr.bf16.mxu1 %v1725_v30 }
 0x39d   : > { %3217 = vtanh.f32 %v1668_v35  ;;  %v1672_v13 = vadd.f32 %v1671_v36, %v1511_v58  ;;  %1903 = vmatpush1.bf16.msra.mxu1 %v1724_v54 }
 0x39e   : > { %v3208_v19 = vpop.eup %3207  ;;  %3219 = vtanh.f32 %v1670_v59  ;;  %v1789_v59 = vpop.permute.xlu0 %1788 }
 0x39f   : > { %v3210_v22 = vpop.eup %3209  ;;  %3221 = vtanh.f32 %v1672_v13 }
 0x3a0   : > { %v3212_v16 = vpop.eup %3211 }
 0x3a1   : > { %v3214_v32 = vpop.eup %3213  ;;  %v1675_v48 = vpop.f32.mrb[28].mxu1  ;;  %v1726_v28 = vpack.c.bf16 %v3212_v16, %v3208_v19 }
 0x3a2   : > { %v1676_v33 = vadd.f32 %v1675_v48, %v1516_v38  ;;  %v1677_v60 = vpop.f32.mrb[29].mxu1  ;;  %v1727_v25 = vpack.c.bf16 %v3214_v32, %v3210_v22  ;;  %v1794_v32 = vpop.permute.xlu1 %1793 }
 0x3a3   : > { %v1678_v40 = vadd.f32 %v1677_v60, %v1516_v38  ;;  %v1679_v41 = vpop.f32.mrb[30].mxu1 }
 0x3a4   : > { %3223 = vtanh.f32 %v1676_v33  ;;  %v1680_v0 = vadd.f32 %v1679_v41, %v1521_v4  ;;  %v1681_v42 = vpop.f32.mrb[31].mxu1  ;;  %1904 = vmatprep.subr.bf16.mxu1 %v1727_v25 }
 0x3a5   : > { %3225 = vtanh.f32 %v1678_v40  ;;  %v1682_v1 = vadd.f32 %v1681_v42, %v1521_v4  ;;  %1905 = vmatpush1.bf16.msra.mxu1 %v1726_v28 }
 0x3a6   : > { %v3216_v43 = vpop.eup %3215  ;;  %3227 = vtanh.f32 %v1680_v0  ;;  %v1799_v0 = vpop.permute.xlu0 %1798 }
 0x3a7   : > { %v3218_v44 = vpop.eup %3217  ;;  %3229 = vtanh.f32 %v1682_v1 }
 0x3a8   : > { %v3220_v45 = vpop.eup %3219 }
 0x3a9   : > { %v3222_v51 = vpop.eup %3221  ;;  %v1728_v6 = vpack.c.bf16 %v3220_v45, %v3216_v43 }
 0x3aa   : > { %v1729_v24 = vpack.c.bf16 %v3222_v51, %v3218_v44  ;;  %v1804_v51 = vpop.permute.xlu1 %1803 }
 0x3ac   : > { %1906 = vmatprep.subr.bf16.mxu1 %v1729_v24 }
 0x3ad   : > { %1907 = vmatpush1.bf16.msra.mxu1 %v1728_v6 }
 0x3ae   : > { %v3224_v31 = vpop.eup %3223 }
 0x3af   : > { %v3226_v62 = vpop.eup %3225 }
 0x3b0   : > { %v3228_v55 = vpop.eup %3227 }
 0x3b1   : > { %v3230_v57 = vpop.eup %3229  ;;  %v1730_v21 = vpack.c.bf16 %v3228_v55, %v3224_v31 }
 0x3b2   : > { %v1731_v26 = vpack.c.bf16 %v3230_v57, %v3226_v62 }
 0x3b4   : > { %1908 = vmatprep.subr.bf16.mxu1 %v1731_v26 }
 0x3b5   : > { %1909 = vmatpush1.bf16.msra.mxu1 %v1730_v21 }
 0x3b8   : > { %1927 = vmatmul.mubr.bf16.vlgmr.msra.gmra.mrb[32].mxu1 %v3063_v18 }
 0x3b9   : > { %1936 = vmatprep.mubr.bf16.mxu1 %v3446_v34 }
 0x3c0   : > { %1937 = vmatmul.mubr.bf16.gmra.mrb[36].mxu1 %v3064_v49  ;;  %v1809_v49 = vpop.permute.xlu0 %1808 }
 0x3c1   : > { %1946 = vmatprep.mubr.bf16.mxu1 %v3446_v34 }
 0x3c8   : > { %1947 = vmatmul.mubr.bf16.gmra.mrb[40].mxu1 %v3065_v7 }
 0x3c9   : > { %1956 = vmatprep.mubr.bf16.mxu1 %v3446_v34 }
 0x3d0   : > { %1957 = vmatmul.mubr.bf16.gmra.mrb[44].mxu1 %v3066_v46 }
 0x3d1   : > { %1966 = vmatprep.mubr.bf16.mxu1 %v3446_v34 }
 0x3d8   : > { %1967 = vmatmul.mubr.bf16.gmra.mrb[48].mxu1 %v3067_v63 }
 0x3d9   : > { %1976 = vmatprep.mubr.bf16.mxu1 %v3446_v34 }
 0x3e0   : > { %1977 = vmatmul.mubr.bf16.gmra.mrb[52].mxu1 %v3068_v17 }
 0x3e1   : > { %1986 = vmatprep.mubr.bf16.mxu1 %v3446_v34 }
 0x3e8   : > { %1987 = vmatmul.mubr.bf16.gmra.mrb[56].mxu1 %v3069_v50 }
 0x3e9   : > { %1996 = vmatprep.mubr.bf16.mxu1 %v3446_v34 }
 0x3f0   : > { %1997 = vmatmul.mubr.bf16.gmra.mrb[60].mxu1 %v3070_v52  ;;  %v1814_v52 = vpop.permute.xlu1 %1813 }
 0x3f1   : > { %2565 = vmatprep.mubr.bf16.mxu1 %v3446_v34 }
 0x48b   : > { %v1928_v2 = vpop.f32.mrb[32].mxu1 }
 0x48c   : > { %v1929_v3 = vadd.f32 %v1928_v2, %v1769_v37  ;;  %v1930_v39 = vpop.f32.mrb[33].mxu1 }
 0x48d   : > { %v1931_v8 = vadd.f32 %v1930_v39, %v1769_v37  ;;  %v1932_v9 = vpop.f32.mrb[34].mxu1 }
 0x48e   : > { %3231 = vtanh.f32 %v1929_v3  ;;  %v1933_v10 = vadd.f32 %v1932_v9, %v1774_v5  ;;  %v1934_v11 = vpop.f32.mrb[35].mxu1 }
 0x48f   : > { %3233 = vtanh.f32 %v1931_v8  ;;  %v1935_v12 = vadd.f32 %v1934_v11, %v1774_v5 }
 0x490   : > { %3235 = vtanh.f32 %v1933_v10 }
 0x491   : > { %3237 = vtanh.f32 %v1935_v12  ;;  %v1819_v12 = vpop.permute.xlu0 %1818 }
 0x493   : > { %v1938_v15 = vpop.f32.mrb[36].mxu1 }
 0x494   : > { %v1939_v20 = vadd.f32 %v1938_v15, %v1779_v14  ;;  %v1940_v53 = vpop.f32.mrb[37].mxu1 }
 0x495   : > { %v1941_v27 = vadd.f32 %v1940_v53, %v1779_v14  ;;  %v1942_v29 = vpop.f32.mrb[38].mxu1 }
 0x496   : > { %3239 = vtanh.f32 %v1939_v20  ;;  %v1943_v54 = vadd.f32 %v1942_v29, %v1784_v23  ;;  %v1944_v56 = vpop.f32.mrb[39].mxu1 }
 0x497   : > { %3241 = vtanh.f32 %v1941_v27  ;;  %v1945_v47 = vadd.f32 %v1944_v56, %v1784_v23  ;;  %v1824_v27 = vpop.permute.xlu1 %1823 }
 0x498   : > { %v3232_v30 = vpop.eup %3231  ;;  %3243 = vtanh.f32 %v1943_v54 }
 0x499   : > { %v3234_v58 = vpop.eup %3233  ;;  %3245 = vtanh.f32 %v1945_v47 }
 0x49a   : > { %v3236_v35 = vpop.eup %3235 }
 0x49b   : > { %v3238_v61 = vpop.eup %3237  ;;  %v1948_v36 = vpop.f32.mrb[40].mxu1  ;;  %v2039_v13 = vpack.c.bf16 %v3236_v35, %v3232_v30 }
 0x49c   : > { %v1949_v19 = vadd.f32 %v1948_v36, %v1789_v59  ;;  %v1950_v22 = vpop.f32.mrb[41].mxu1  ;;  %v2040_v16 = vpack.c.bf16 %v3238_v61, %v3234_v58  ;;  %v1829_v36 = vpop.permute.xlu0 %1828 }
 0x49d   : > { %v1951_v38 = vadd.f32 %v1950_v22, %v1789_v59  ;;  %v1952_v48 = vpop.f32.mrb[42].mxu1 }
 0x49e   : > { %3247 = vtanh.f32 %v1949_v19  ;;  %v1953_v28 = vadd.f32 %v1952_v48, %v1794_v32  ;;  %v1954_v33 = vpop.f32.mrb[43].mxu1  ;;  %2217 = vmatprep.subr.bf16.mxu0 %v2040_v16 }
 0x49f   : > { %3249 = vtanh.f32 %v1951_v38  ;;  %v1955_v60 = vadd.f32 %v1954_v33, %v1794_v32  ;;  %2218 = vmatpush1.bf16.msra.mxu0 %v2039_v13  ;;  %v1834_v38 = vpop.permute.xlu1 %1833 }
 0x4a0   : > { %v3240_v25 = vpop.eup %3239  ;;  %3251 = vtanh.f32 %v1953_v28 }
 0x4a1   : > { %v3242_v4 = vpop.eup %3241  ;;  %3253 = vtanh.f32 %v1955_v60 }
 0x4a2   : > { %v3244_v40 = vpop.eup %3243 }
 0x4a3   : > { %v3246_v41 = vpop.eup %3245  ;;  %v1958_v42 = vpop.f32.mrb[44].mxu1  ;;  %v2041_v1 = vpack.c.bf16 %v3244_v40, %v3240_v25 }
 0x4a4   : > { %v1959_v43 = vadd.f32 %v1958_v42, %v1799_v0  ;;  %v1960_v44 = vpop.f32.mrb[45].mxu1  ;;  %v2042_v45 = vpack.c.bf16 %v3246_v41, %v3242_v4  ;;  %v1839_v42 = vpop.permute.xlu0 %1838 }
 0x4a5   : > { %v1961_v6 = vadd.f32 %v1960_v44, %v1799_v0  ;;  %v1962_v24 = vpop.f32.mrb[46].mxu1 }
 0x4a6   : > { %3255 = vtanh.f32 %v1959_v43  ;;  %v1963_v31 = vadd.f32 %v1962_v24, %v1804_v51  ;;  %v1964_v62 = vpop.f32.mrb[47].mxu1  ;;  %2219 = vmatprep.subr.bf16.mxu0 %v2042_v45 }
 0x4a7   : > { %3257 = vtanh.f32 %v1961_v6  ;;  %v1965_v55 = vadd.f32 %v1964_v62, %v1804_v51  ;;  %2220 = vmatpush1.bf16.msra.mxu0 %v2041_v1  ;;  %v1844_v6 = vpop.permute.xlu1 %1843 }
 0x4a8   : > { %v3248_v57 = vpop.eup %3247  ;;  %3259 = vtanh.f32 %v1963_v31 }
 0x4a9   : > { %v3250_v21 = vpop.eup %3249  ;;  %3261 = vtanh.f32 %v1965_v55 }
 0x4aa   : > { %v3252_v26 = vpop.eup %3251 }
 0x4ab   : > { %v3254_v18 = vpop.eup %3253  ;;  %v1968_v7 = vpop.f32.mrb[48].mxu1  ;;  %v2043_v46 = vpack.c.bf16 %v3252_v26, %v3248_v57 }
 0x4ac   : > { %v1969_v63 = vadd.f32 %v1968_v7, %v1809_v49  ;;  %v1970_v17 = vpop.f32.mrb[49].mxu1  ;;  %v2044_v50 = vpack.c.bf16 %v3254_v18, %v3250_v21 }
 0x4ad   : > { %v1971_v37 = vadd.f32 %v1970_v17, %v1809_v49  ;;  %v1972_v2 = vpop.f32.mrb[50].mxu1 }
 0x4ae   : > { %3263 = vtanh.f32 %v1969_v63  ;;  %v1973_v3 = vadd.f32 %v1972_v2, %v1814_v52  ;;  %v1974_v39 = vpop.f32.mrb[51].mxu1  ;;  %2221 = vmatprep.subr.bf16.mxu0 %v2044_v50 }
 0x4af   : > { %3265 = vtanh.f32 %v1971_v37  ;;  %v1975_v5 = vadd.f32 %v1974_v39, %v1814_v52  ;;  %2222 = vmatpush1.bf16.msra.mxu0 %v2043_v46  ;;  %v3072_v39 = vld [vmem:[%s4343_s4 + $0x88] sm:$0xff]  }
 0x4b0   : > { %v3256_v8 = vpop.eup %3255  ;;  %3267 = vtanh.f32 %v1973_v3  ;;  %v3071_v3 = vld [vmem:[%s4343_s4 + $0x80] sm:$0xff]  }
 0x4b1   : > { %v3258_v9 = vpop.eup %3257  ;;  %3269 = vtanh.f32 %v1975_v5  ;;  %v3073_v5 = vld [vmem:[%s4343_s4 + $0x90] sm:$0xff]  }
 0x4b2   : > { %v3260_v10 = vpop.eup %3259 }
 0x4b3   : > { %v3262_v11 = vpop.eup %3261  ;;  %v1978_v14 = vpop.f32.mrb[52].mxu1  ;;  %v2045_v15 = vpack.c.bf16 %v3260_v10, %v3256_v8  ;;  %v3074_v8 = vld [vmem:[%s4343_s4 + $0x98] sm:$0xff]   ;;  %v3076_v10 = vld [vmem:[%s4343_s4 + $0xa8] sm:$0xff]  }
 0x4b4   : > { %v1979_v20 = vadd.f32 %v1978_v14, %v1819_v12  ;;  %v1980_v53 = vpop.f32.mrb[53].mxu1  ;;  %v2046_v23 = vpack.c.bf16 %v3262_v11, %v3258_v9  ;;  %v3075_v9 = vld [vmem:[%s4343_s4 + $0xa0] sm:$0xff]   ;;  %v3077_v11 = vld [vmem:[%s4343_s4 + $0xb0] sm:$0xff]   ;;  %v2092_v14 = vpop.permute.xlu0 %2091 }
 0x4b5   : > { %v1981_v29 = vadd.f32 %v1980_v53, %v1819_v12  ;;  %v1982_v54 = vpop.f32.mrb[54].mxu1  ;;  %v3078_v12 = vld [vmem:[%s4343_s4 + $0xb8] sm:$0xff]  }
 0x4b6   : > { %3271 = vtanh.f32 %v1979_v20  ;;  %v1983_v56 = vadd.f32 %v1982_v54, %v1824_v27  ;;  %v1984_v47 = vpop.f32.mrb[55].mxu1  ;;  %2223 = vmatprep.subr.bf16.mxu0 %v2046_v23  ;;  %v2097_v23 = vpop.permute.xlu1 %2096 }
 0x4b7   : > { %3273 = vtanh.f32 %v1981_v29  ;;  %v1985_v30 = vadd.f32 %v1984_v47, %v1824_v27  ;;  %2224 = vmatpush1.bf16.msra.mxu0 %v2045_v15 }
 0x4b8   : > { %v3264_v58 = vpop.eup %3263  ;;  %3275 = vtanh.f32 %v1983_v56 }
 0x4b9   : > { %v3266_v35 = vpop.eup %3265  ;;  %3277 = vtanh.f32 %v1985_v30  ;;  %v2102_v30 = vpop.permute.xlu0 %2101 }
 0x4ba   : > { %v3268_v61 = vpop.eup %3267 }
 0x4bb   : > { %v3270_v59 = vpop.eup %3269  ;;  %v1988_v13 = vpop.f32.mrb[56].mxu1  ;;  %v2047_v19 = vpack.c.bf16 %v3268_v61, %v3264_v58 }
 0x4bc   : > { %v1989_v22 = vadd.f32 %v1988_v13, %v1829_v36  ;;  %v1990_v16 = vpop.f32.mrb[57].mxu1  ;;  %v2048_v32 = vpack.c.bf16 %v3270_v59, %v3266_v35  ;;  %v2107_v59 = vpop.permute.xlu1 %2106 }
 0x4bd   : > { %v1991_v48 = vadd.f32 %v1990_v16, %v1829_v36  ;;  %v1992_v28 = vpop.f32.mrb[58].mxu1 }
 0x4be   : > { %3279 = vtanh.f32 %v1989_v22  ;;  %v1993_v33 = vadd.f32 %v1992_v28, %v1834_v38  ;;  %v1994_v60 = vpop.f32.mrb[59].mxu1  ;;  %2225 = vmatprep.subr.bf16.mxu0 %v2048_v32 }
 0x4bf   : > { %3281 = vtanh.f32 %v1991_v48  ;;  %v1995_v25 = vadd.f32 %v1994_v60, %v1834_v38  ;;  %2226 = vmatpush1.bf16.msra.mxu0 %v2047_v19 }
 0x4c0   : > { %v3272_v4 = vpop.eup %3271  ;;  %3283 = vtanh.f32 %v1993_v33  ;;  %v2112_v33 = vpop.permute.xlu0 %2111 }
 0x4c1   : > { %v3274_v40 = vpop.eup %3273  ;;  %3285 = vtanh.f32 %v1995_v25 }
 0x4c2   : > { %v3276_v41 = vpop.eup %3275 }
 0x4c3   : > { %v3278_v0 = vpop.eup %3277  ;;  %v1998_v1 = vpop.f32.mrb[60].mxu1  ;;  %v2049_v43 = vpack.c.bf16 %v3276_v41, %v3272_v4 }
 0x4c4   : > { %v1999_v44 = vadd.f32 %v1998_v1, %v1839_v42  ;;  %v2000_v45 = vpop.f32.mrb[61].mxu1  ;;  %v2050_v51 = vpack.c.bf16 %v3278_v0, %v3274_v40  ;;  %v2117_v0 = vpop.permute.xlu1 %2116 }
 0x4c5   : > { %v2001_v24 = vadd.f32 %v2000_v45, %v1839_v42  ;;  %v2002_v31 = vpop.f32.mrb[62].mxu1 }
 0x4c6   : > { %3287 = vtanh.f32 %v1999_v44  ;;  %v2003_v62 = vadd.f32 %v2002_v31, %v1844_v6  ;;  %v2004_v55 = vpop.f32.mrb[63].mxu1  ;;  %2227 = vmatprep.subr.bf16.mxu0 %v2050_v51 }
 0x4c7   : > { %3289 = vtanh.f32 %v2001_v24  ;;  %v2005_v57 = vadd.f32 %v2004_v55, %v1844_v6  ;;  %2228 = vmatpush1.bf16.msra.mxu0 %v2049_v43 }
 0x4c8   : > { %v3280_v21 = vpop.eup %3279  ;;  %3291 = vtanh.f32 %v2003_v62  ;;  %v2122_v62 = vpop.permute.xlu0 %2121 }
 0x4c9   : > { %v3282_v26 = vpop.eup %3281  ;;  %3293 = vtanh.f32 %v2005_v57 }
 0x4ca   : > { %v3284_v18 = vpop.eup %3283 }
 0x4cb   : > { %v3286_v49 = vpop.eup %3285  ;;  %v2051_v7 = vpack.c.bf16 %v3284_v18, %v3280_v21 }
 0x4cc   : > { %v2052_v46 = vpack.c.bf16 %v3286_v49, %v3282_v26  ;;  %v2127_v49 = vpop.permute.xlu1 %2126 }
 0x4ce   : > { %2229 = vmatprep.subr.bf16.mxu0 %v2052_v46 }
 0x4cf   : > { %2230 = vmatpush1.bf16.msra.mxu0 %v2051_v7 }
 0x4d0   : > { %v3288_v63 = vpop.eup %3287 }
 0x4d1   : > { %v3290_v17 = vpop.eup %3289 }
 0x4d2   : > { %v3292_v50 = vpop.eup %3291 }
 0x4d3   : > { %v3294_v52 = vpop.eup %3293  ;;  %v2053_v37 = vpack.c.bf16 %v3292_v50, %v3288_v63 }
 0x4d4   : > { %v2054_v2 = vpack.c.bf16 %v3294_v52, %v3290_v17 }
 0x4d6   : > { %2231 = vmatprep.subr.bf16.mxu0 %v2054_v2 }
 0x4d7   : > { %2232 = vmatpush1.bf16.msra.mxu0 %v2053_v37 }
 0x4da   : > { %2250 = vmatmul.mubr.bf16.vlgmr.msra.gmra.mrb[36].mxu0 %v3071_v3 }
 0x4db   : > { %2259 = vmatprep.mubr.bf16.mxu0 %v3446_v34 }
 0x4e2   : > { %2260 = vmatmul.mubr.bf16.gmra.mrb[40].mxu0 %v3072_v39  ;;  %v2132_v39 = vpop.permute.xlu0 %2131 }
 0x4e3   : > { %2269 = vmatprep.mubr.bf16.mxu0 %v3446_v34 }
 0x4ea   : > { %2270 = vmatmul.mubr.bf16.gmra.mrb[44].mxu0 %v3073_v5 }
 0x4eb   : > { %2279 = vmatprep.mubr.bf16.mxu0 %v3446_v34 }
 0x4f2   : > { %2280 = vmatmul.mubr.bf16.gmra.mrb[48].mxu0 %v3074_v8 }
 0x4f3   : > { %2289 = vmatprep.mubr.bf16.mxu0 %v3446_v34 }
 0x4fa   : > { %2290 = vmatmul.mubr.bf16.gmra.mrb[52].mxu0 %v3075_v9 }
 0x4fb   : > { %2299 = vmatprep.mubr.bf16.mxu0 %v3446_v34 }
 0x502   : > { %2300 = vmatmul.mubr.bf16.gmra.mrb[56].mxu0 %v3076_v10 }
 0x503   : > { %2309 = vmatprep.mubr.bf16.mxu0 %v3446_v34 }
 0x50a   : > { %2310 = vmatmul.mubr.bf16.gmra.mrb[60].mxu0 %v3077_v11 }
 0x50b   : > { %2319 = vmatprep.mubr.bf16.mxu0 %v3446_v34 }
 0x512   : > { %2320 = vmatmul.mubr.bf16.gmra.mrb[64].mxu0 %v3078_v12  ;;  %v2137_v12 = vpop.permute.xlu1 %2136 }
 0x513   : > { %2557 = vmatprep.mubr.bf16.mxu0 %v3446_v34 }
 0x5ad   : > { %v2251_v15 = vpop.f32.mrb[36].mxu0 }
 0x5ae   : > { %v2252_v20 = vadd.f32 %v2251_v15, %v2092_v14  ;;  %v2253_v53 = vpop.f32.mrb[37].mxu0 }
 0x5af   : > { %v2254_v27 = vadd.f32 %v2253_v53, %v2092_v14  ;;  %v2255_v29 = vpop.f32.mrb[38].mxu0 }
 0x5b0   : > { %3295 = vtanh.f32 %v2252_v20  ;;  %v2256_v54 = vadd.f32 %v2255_v29, %v2097_v23  ;;  %v2257_v56 = vpop.f32.mrb[39].mxu0 }
 0x5b1   : > { %3297 = vtanh.f32 %v2254_v27  ;;  %v2258_v47 = vadd.f32 %v2257_v56, %v2097_v23 }
 0x5b2   : > { %3299 = vtanh.f32 %v2256_v54 }
 0x5b3   : > { %3301 = vtanh.f32 %v2258_v47  ;;  %v2142_v47 = vpop.permute.xlu0 %2141 }
 0x5b5   : > { %v2261_v58 = vpop.f32.mrb[40].mxu0 }
 0x5b6   : > { %v2262_v35 = vadd.f32 %v2261_v58, %v2102_v30  ;;  %v2263_v61 = vpop.f32.mrb[41].mxu0 }
 0x5b7   : > { %v2264_v36 = vadd.f32 %v2263_v61, %v2102_v30  ;;  %v2265_v13 = vpop.f32.mrb[42].mxu0 }
 0x5b8   : > { %3303 = vtanh.f32 %v2262_v35  ;;  %v2266_v19 = vadd.f32 %v2265_v13, %v2107_v59  ;;  %v2267_v22 = vpop.f32.mrb[43].mxu0 }
 0x5b9   : > { %3305 = vtanh.f32 %v2264_v36  ;;  %v2268_v16 = vadd.f32 %v2267_v22, %v2107_v59  ;;  %v2147_v36 = vpop.permute.xlu1 %2146 }
 0x5ba   : > { %v3296_v32 = vpop.eup %3295  ;;  %3307 = vtanh.f32 %v2266_v19 }
 0x5bb   : > { %v3298_v38 = vpop.eup %3297  ;;  %3309 = vtanh.f32 %v2268_v16 }
 0x5bc   : > { %v3300_v48 = vpop.eup %3299 }
 0x5bd   : > { %v3302_v28 = vpop.eup %3301  ;;  %v2271_v60 = vpop.f32.mrb[44].mxu0  ;;  %v2362_v25 = vpack.c.bf16 %v3300_v48, %v3296_v32 }
 0x5be   : > { %v2272_v4 = vadd.f32 %v2271_v60, %v2112_v33  ;;  %v2273_v40 = vpop.f32.mrb[45].mxu0  ;;  %v2363_v41 = vpack.c.bf16 %v3302_v28, %v3298_v38  ;;  %v2152_v60 = vpop.permute.xlu0 %2151 }
 0x5bf   : > { %v2274_v42 = vadd.f32 %v2273_v40, %v2112_v33  ;;  %v2275_v1 = vpop.f32.mrb[46].mxu0 }
 0x5c0   : > { %3311 = vtanh.f32 %v2272_v4  ;;  %v2276_v43 = vadd.f32 %v2275_v1, %v2117_v0  ;;  %v2277_v44 = vpop.f32.mrb[47].mxu0  ;;  %2525 = vmatprep.subr.bf16.mxu0 %v2363_v41  ;;  %2926 = vmatprep.subr.bf16.mxu1 %v2363_v41 }
 0x5c1   : > { %3313 = vtanh.f32 %v2274_v42  ;;  %v2278_v45 = vadd.f32 %v2277_v44, %v2117_v0  ;;  %2526 = vmatpush1.bf16.msra.mxu0 %v2362_v25  ;;  %2934 = vmatpush1.bf16.msra.mxu1 %v2362_v25  ;;  %v2157_v42 = vpop.permute.xlu1 %2156 }
 0x5c2   : > { %v3304_v51 = vpop.eup %3303  ;;  %3315 = vtanh.f32 %v2276_v43 }
 0x5c3   : > { %v3306_v6 = vpop.eup %3305  ;;  %3317 = vtanh.f32 %v2278_v45 }
 0x5c4   : > { %v3308_v24 = vpop.eup %3307 }
 0x5c5   : > { %v3310_v31 = vpop.eup %3309  ;;  %v2281_v55 = vpop.f32.mrb[48].mxu0  ;;  %v2364_v57 = vpack.c.bf16 %v3308_v24, %v3304_v51 }
 0x5c6   : > { %v2282_v21 = vadd.f32 %v2281_v55, %v2122_v62  ;;  %v2283_v26 = vpop.f32.mrb[49].mxu0  ;;  %v2365_v18 = vpack.c.bf16 %v3310_v31, %v3306_v6  ;;  %v2162_v55 = vpop.permute.xlu0 %2161 }
 0x5c7   : > { %v2284_v7 = vadd.f32 %v2283_v26, %v2122_v62  ;;  %v2285_v46 = vpop.f32.mrb[50].mxu0 }
 0x5c8   : > { %3319 = vtanh.f32 %v2282_v21  ;;  %v2286_v63 = vadd.f32 %v2285_v46, %v2127_v49  ;;  %v2287_v17 = vpop.f32.mrb[51].mxu0  ;;  %2527 = vmatprep.subr.bf16.mxu0 %v2365_v18  ;;  %2927 = vmatprep.subr.bf16.mxu1 %v2365_v18 }
 0x5c9   : > { %3321 = vtanh.f32 %v2284_v7  ;;  %v2288_v50 = vadd.f32 %v2287_v17, %v2127_v49  ;;  %2528 = vmatpush1.bf16.msra.mxu0 %v2364_v57  ;;  %2935 = vmatpush1.bf16.msra.mxu1 %v2364_v57  ;;  %v2167_v7 = vpop.permute.xlu1 %2166 }
 0x5ca   : > { %v3312_v52 = vpop.eup %3311  ;;  %3323 = vtanh.f32 %v2286_v63 }
 0x5cb   : > { %v3314_v37 = vpop.eup %3313  ;;  %3325 = vtanh.f32 %v2288_v50 }
 0x5cc   : > { %v3316_v2 = vpop.eup %3315 }
 0x5cd   : > { %v3318_v3 = vpop.eup %3317  ;;  %v2291_v5 = vpop.f32.mrb[52].mxu0  ;;  %v2366_v8 = vpack.c.bf16 %v3316_v2, %v3312_v52 }
 0x5ce   : > { %v2292_v9 = vadd.f32 %v2291_v5, %v2132_v39  ;;  %v2293_v10 = vpop.f32.mrb[53].mxu0  ;;  %v2367_v11 = vpack.c.bf16 %v3318_v3, %v3314_v37 }
 0x5cf   : > { %v2294_v14 = vadd.f32 %v2293_v10, %v2132_v39  ;;  %v2295_v15 = vpop.f32.mrb[54].mxu0 }
 0x5d0   : > { %3327 = vtanh.f32 %v2292_v9  ;;  %v2296_v20 = vadd.f32 %v2295_v15, %v2137_v12  ;;  %v2297_v53 = vpop.f32.mrb[55].mxu0  ;;  %2529 = vmatprep.subr.bf16.mxu0 %v2367_v11  ;;  %2928 = vmatprep.subr.bf16.mxu1 %v2367_v11 }
 0x5d1   : > { %3329 = vtanh.f32 %v2294_v14  ;;  %v2298_v23 = vadd.f32 %v2297_v53, %v2137_v12  ;;  %2530 = vmatpush1.bf16.msra.mxu0 %v2366_v8  ;;  %2936 = vmatpush1.bf16.msra.mxu1 %v2366_v8  ;;  %v3080_v53 = vld [vmem:[%s4343_s4 + $0xc8] sm:$0xff]  }
 0x5d2   : > { %v3320_v27 = vpop.eup %3319  ;;  %3331 = vtanh.f32 %v2296_v20  ;;  %v3079_v20 = vld [vmem:[%s4343_s4 + $0xc0] sm:$0xff]  }
 0x5d3   : > { %v3322_v29 = vpop.eup %3321  ;;  %3333 = vtanh.f32 %v2298_v23  ;;  %v3081_v23 = vld [vmem:[%s4343_s4 + $0xd0] sm:$0xff]  }
 0x5d4   : > { %v3324_v54 = vpop.eup %3323 }
 0x5d5   : > { %v3326_v56 = vpop.eup %3325  ;;  %v2301_v30 = vpop.f32.mrb[56].mxu0  ;;  %v2368_v58 = vpack.c.bf16 %v3324_v54, %v3320_v27  ;;  %v3082_v27 = vld [vmem:[%s4343_s4 + $0xd8] sm:$0xff]   ;;  %v3084_v54 = vld [vmem:[%s4343_s4 + $0xe8] sm:$0xff]  }
 0x5d6   : > { %v2302_v35 = vadd.f32 %v2301_v30, %v2142_v47  ;;  %v2303_v61 = vpop.f32.mrb[57].mxu0  ;;  %v2369_v59 = vpack.c.bf16 %v3326_v56, %v3322_v29  ;;  %v3083_v29 = vld [vmem:[%s4343_s4 + $0xe0] sm:$0xff]   ;;  %v3085_v56 = vld [vmem:[%s4343_s4 + $0xf0] sm:$0xff]   ;;  %v2415_v30 = vpop.permute.xlu0 %2414 }
 0x5d7   : > { %v2304_v13 = vadd.f32 %v2303_v61, %v2142_v47  ;;  %v2305_v19 = vpop.f32.mrb[58].mxu0  ;;  %v3086_v47 = vld [vmem:[%s4343_s4 + $0xf8] sm:$0xff]  }
 0x5d8   : > { %3335 = vtanh.f32 %v2302_v35  ;;  %v2306_v22 = vadd.f32 %v2305_v19, %v2147_v36  ;;  %v2307_v16 = vpop.f32.mrb[59].mxu0  ;;  %2531 = vmatprep.subr.bf16.mxu0 %v2369_v59  ;;  %2929 = vmatprep.subr.bf16.mxu1 %v2369_v59 }
 0x5d9   : > { %3337 = vtanh.f32 %v2304_v13  ;;  %v2308_v32 = vadd.f32 %v2307_v16, %v2147_v36  ;;  %2532 = vmatpush1.bf16.msra.mxu0 %v2368_v58  ;;  %2937 = vmatpush1.bf16.msra.mxu1 %v2368_v58 }
 0x5da   : > { %v3328_v38 = vpop.eup %3327  ;;  %3339 = vtanh.f32 %v2306_v22 }
 0x5db   : > { %v3330_v48 = vpop.eup %3329  ;;  %3341 = vtanh.f32 %v2308_v32 }
 0x5dc   : > { %v3332_v28 = vpop.eup %3331 }
 0x5dd   : > { %v3334_v33 = vpop.eup %3333  ;;  %v2311_v25 = vpop.f32.mrb[60].mxu0  ;;  %v2370_v4 = vpack.c.bf16 %v3332_v28, %v3328_v38 }
 0x5de   : > { %v2312_v40 = vadd.f32 %v2311_v25, %v2152_v60  ;;  %v2313_v41 = vpop.f32.mrb[61].mxu0  ;;  %v2371_v0 = vpack.c.bf16 %v3334_v33, %v3330_v48 }
 0x5df   : > { %v2314_v1 = vadd.f32 %v2313_v41, %v2152_v60  ;;  %v2315_v43 = vpop.f32.mrb[62].mxu0 }
 0x5e0   : > { %3343 = vtanh.f32 %v2312_v40  ;;  %v2316_v44 = vadd.f32 %v2315_v43, %v2157_v42  ;;  %v2317_v45 = vpop.f32.mrb[63].mxu0  ;;  %2533 = vmatprep.subr.bf16.mxu0 %v2371_v0  ;;  %2930 = vmatprep.subr.bf16.mxu1 %v2371_v0 }
 0x5e1   : > { %3345 = vtanh.f32 %v2314_v1  ;;  %v2318_v51 = vadd.f32 %v2317_v45, %v2157_v42  ;;  %2534 = vmatpush1.bf16.msra.mxu0 %v2370_v4  ;;  %2938 = vmatpush1.bf16.msra.mxu1 %v2370_v4 }
 0x5e2   : > { %v3336_v6 = vpop.eup %3335  ;;  %3347 = vtanh.f32 %v2316_v44 }
 0x5e3   : > { %v3338_v24 = vpop.eup %3337  ;;  %3349 = vtanh.f32 %v2318_v51 }
 0x5e4   : > { %v3340_v31 = vpop.eup %3339 }
 0x5e5   : > { %v3342_v62 = vpop.eup %3341  ;;  %v2321_v57 = vpop.f32.mrb[64].mxu0  ;;  %v2372_v21 = vpack.c.bf16 %v3340_v31, %v3336_v6 }
 0x5e6   : > { %v2322_v26 = vadd.f32 %v2321_v57, %v2162_v55  ;;  %v2323_v18 = vpop.f32.mrb[65].mxu0  ;;  %v2373_v49 = vpack.c.bf16 %v3342_v62, %v3338_v24 }
 0x5e7   : > { %v2324_v46 = vadd.f32 %v2323_v18, %v2162_v55  ;;  %v2325_v63 = vpop.f32.mrb[66].mxu0 }
 0x5e8   : > { %3351 = vtanh.f32 %v2322_v26  ;;  %v2326_v17 = vadd.f32 %v2325_v63, %v2167_v7  ;;  %v2327_v50 = vpop.f32.mrb[67].mxu0  ;;  %2535 = vmatprep.subr.bf16.mxu0 %v2373_v49  ;;  %2931 = vmatprep.subr.bf16.mxu1 %v2373_v49 }
 0x5e9   : > { %3353 = vtanh.f32 %v2324_v46  ;;  %v2328_v52 = vadd.f32 %v2327_v50, %v2167_v7  ;;  %2536 = vmatpush1.bf16.msra.mxu0 %v2372_v21  ;;  %2939 = vmatpush1.bf16.msra.mxu1 %v2372_v21 }
 0x5ea   : > { %v3344_v37 = vpop.eup %3343  ;;  %3355 = vtanh.f32 %v2326_v17 }
 0x5eb   : > { %v3346_v2 = vpop.eup %3345  ;;  %3357 = vtanh.f32 %v2328_v52 }
 0x5ec   : > { %v3348_v3 = vpop.eup %3347 }
 0x5ed   : > { %v3350_v39 = vpop.eup %3349  ;;  %v2374_v5 = vpack.c.bf16 %v3348_v3, %v3344_v37 }
 0x5ee   : > { %v2375_v8 = vpack.c.bf16 %v3350_v39, %v3346_v2 }
 0x5f0   : > { %2537 = vmatprep.subr.bf16.mxu0 %v2375_v8  ;;  %2932 = vmatprep.subr.bf16.mxu1 %v2375_v8 }
 0x5f1   : > { %2538 = vmatpush1.bf16.msra.mxu0 %v2374_v5  ;;  %2940 = vmatpush1.bf16.msra.mxu1 %v2374_v5 }
 0x5f2   : > { %v3352_v9 = vpop.eup %3351 }
 0x5f3   : > { %v3354_v10 = vpop.eup %3353 }
 0x5f4   : > { %v3356_v11 = vpop.eup %3355 }
 0x5f5   : > { %v3358_v12 = vpop.eup %3357  ;;  %v2376_v14 = vpack.c.bf16 %v3356_v11, %v3352_v9 }
 0x5f6   : > { %v2377_v15 = vpack.c.bf16 %v3358_v12, %v3354_v10 }
 0x5f8   : > { %2539 = vmatprep.subr.bf16.mxu0 %v2377_v15  ;;  %2933 = vmatprep.subr.bf16.mxu1 %v2377_v15 }
 0x5f9   : > { %2540 = vmatpush1.bf16.msra.mxu0 %v2376_v14  ;;  %2941 = vmatpush1.bf16.msra.mxu1 %v2376_v14 }
 0x5fc   : > { %2558 = vmatmul.mubr.bf16.vlgmr.msra.gmra.mrb[68].mxu0 %v3079_v20  ;;  %2566 = vmatmul.mubr.bf16.vlgmr.msra.gmra.mrb[64].mxu1 %v3080_v53 }
 0x5fd   : > { %2571 = vmatprep.mubr.bf16.mxu1 %v3446_v34 }
 0x604   : > { %2572 = vmatmul.mubr.bf16.gmra.mrb[68].mxu1 %v3081_v23 }
 0x605   : > { %2577 = vmatprep.mubr.bf16.mxu1 %v3446_v34 }
 0x60c   : > { %2578 = vmatmul.mubr.bf16.gmra.mrb[72].mxu1 %v3082_v27 }
 0x60d   : > { %2583 = vmatprep.mubr.bf16.mxu1 %v3446_v34 }
 0x614   : > { %2584 = vmatmul.mubr.bf16.gmra.mrb[76].mxu1 %v3083_v29 }
 0x615   : > { %2589 = vmatprep.mubr.bf16.mxu1 %v3446_v34 }
 0x61c   : > { %2590 = vmatmul.mubr.bf16.gmra.mrb[80].mxu1 %v3084_v54 }
 0x61d   : > { %2595 = vmatprep.mubr.bf16.mxu1 %v3446_v34 }
 0x624   : > { %2596 = vmatmul.mubr.bf16.gmra.mrb[84].mxu1 %v3085_v56 }
 0x625   : > { %2601 = vmatprep.mubr.bf16.mxu1 %v3446_v34 }
 0x62c   : > { %2602 = vmatmul.mubr.bf16.gmra.mrb[88].mxu1 %v3086_v47 }
 0x6cf   : > { %v2559_v58 = vpop.f32.mrb[68].mxu0  ;;  %v2567_v35 = vpop.f32.mrb[64].mxu1 }
 0x6d0   : > { %v2560_v61 = vadd.f32 %v2559_v58, %v2415_v30  ;;  %v2561_v59 = vpop.f32.mrb[69].mxu0  ;;  %v2568_v36 = vpop.f32.mrb[65].mxu1 }
 0x6d1   : > { %v2562_v13 = vadd.f32 %v2561_v59, %v2415_v30  ;;  %v2569_v19 = vpop.f32.mrb[66].mxu1  ;;  %v2563_v34 = vpop.f32.mrb[70].mxu0 }
 0x6d2   : > { %v2570_v22 = vpop.f32.mrb[67].mxu1  ;;  %v2564_v16 = vpop.f32.mrb[71].mxu0 }
 0x6d3   : > { %v2610_v32 = vcombine.low %v2560_v61, %v2562_v13 }
 0x6d5   : > { %2913 = vst.sshfl [vmem:[%s284_s17] sm:$0x33 pattern:$0x76325410] %v2610_v32 }
 0x6d6   : > { %3372 = shalt.err (!%p3369_p5)
}
 0x6d7   : > { %s3373_s13 = scalar_lea.hbm %s4292_s27, 64  ;;  %s3377_s16 = scalar_lea.hbm %s4345_s6, 128 }
 0x6d8   : > { %p3374_p6 = scmp.ne.s32.totalorder %s4292_s27, %s3373_s13  ;;  %p3378_p10 = scmp.lt.u32.totalorder %s4292_s27, %s4345_s6 }
 0x6d9   : > { %p3379_p11 = scmp.lt.u32.totalorder %s3377_s16, %s3373_s13  ;;  %p3381_p13 = scmp.lt.u32.totalorder %s3373_s13, %s4292_s27 }
 0x6da   : > { %p3375_p7 = pnand %p3374_p6, %p3523_p4 }
 0x6db   : > { %p3380_p12 = por %p3379_p11, %p3378_p10 }
 0x6dc   : > { %p3376_p9 = pneg %p3375_p7 }
 0x6dd   : > { %p3382_p0 = por %p3381_p13, %p3380_p12 }
 0x6df   : > { %p3383_p1 = pnand %p3382_p0, %p3376_p9 }
 0x6e1   : > { %3386 = shalt.err (!%p3383_p1)
}
 0x6e2   : > { %2990 = dma.vmem_to_hbm [thread:$0]  (%p3523_p4), %s4294_s18, 64, %s4292_s27, %s2621_s24   ;;  %v2573_v38 = vpop.f32.mrb[68].mxu1 }
 0x6e3   : > { %v2574_v48 = vpop.f32.mrb[69].mxu1 }
 0x6e4   : > { %v2575_v28 = vpop.f32.mrb[70].mxu1 }
 0x6e5   : > { %v2576_v33 = vpop.f32.mrb[71].mxu1 }
 0x6e6   : > { %v2579_v60 = vpop.f32.mrb[72].mxu1 }
 0x6e7   : > { %v2580_v25 = vpop.f32.mrb[73].mxu1 }
 0x6e8   : > { %v2581_v4 = vpop.f32.mrb[74].mxu1 }
 0x6e9   : > { %v2582_v40 = vpop.f32.mrb[75].mxu1 }
 0x6ea   : > { %v2585_v41 = vpop.f32.mrb[76].mxu1 }
 0x6eb   : > { %v2586_v0 = vpop.f32.mrb[77].mxu1 }
 0x6ec   : > { %v2587_v42 = vpop.f32.mrb[78].mxu1 }
 0x6ed   : > { %v2588_v1 = vpop.f32.mrb[79].mxu1 }
 0x6ef   : > { %v2591_v43 = vpop.f32.mrb[80].mxu1 }
 0x6f0   : > { %v2592_v44 = vpop.f32.mrb[81].mxu1 }
 0x6f1   : > { %v2593_v45 = vpop.f32.mrb[82].mxu1 }
 0x6f2   : > { %v2594_v51 = vpop.f32.mrb[83].mxu1 }
 0x6f7   : > { %v2597_v6 = vpop.f32.mrb[84].mxu1 }
 0x6f8   : > { %v2598_v24 = vpop.f32.mrb[85].mxu1 }
 0x6f9   : > { %v2599_v31 = vpop.f32.mrb[86].mxu1 }
 0x6fa   : > { %v2600_v62 = vpop.f32.mrb[87].mxu1 }
 0x6ff   : > { %v2603_v55 = vpop.f32.mrb[88].mxu1 }
 0x700   : > { %v2604_v57 = vpop.f32.mrb[89].mxu1 }
 0x701   : > { %v2605_v21 = vpop.f32.mrb[90].mxu1 }
 0x702   : > { %v2606_v26 = vpop.f32.mrb[91].mxu1 }
 0x703 PF: > { %p2996_p4 = scmp.ge.s32.totalorder %s3437_s26, 2  ;;  %s2649_s7 = sand.u32 1, %s3417_s21  }
 0x704   : > { %s2650_s18 = scalar_lea.sflag [#allocation3], %s2649_s7 }
 0x705   : > { %p2993_p2 = pnand %p2996_p4, %p3530_p8 }
 0x707   : > { %3412 = dma.done.wait (!%p2993_p2), %s2650_s18, 64  }
 0x708   : > { %3414 = vsyncadd (!%p2993_p2), %s2650_s18, 4294967232  ;;  %s19_s26 = sadd.s32 1, %s3437_s26   ;;  %s4356_s21 = smov %s3421_s22 }
 0x709   : > { %p16_p3 = scmp.ge.s32.totalorder %s19_s26, 4   ;;  %s4357_s22 = smov %s3425_s23 }
 0x70a   : > { %s4358_s23 = smov %s3536_s10  ;;  %s4359_s24 = smov %s3433_s25 }
 0x70b   : > { %s4360_s25 = smov %s4362_s29  ;;  %18 = sbr.rel (!%p16_p3) target bundleno = 4 (0x4), region = 88 }
 0x712   :  { %2655 = vsyncpa [#allocation3], 1 }
 0x713   :  { %2657 = vsyncpa [#allocation3 + $0x1], 1 }

</bundles_post_ra>
